<compile_context>
chip_gen: v6e
topology: v6e:2x2x1
jax: 0.10.0
libtpu: 0.0.40
codegen_flags: <defaults>
</compile_context>

<pallas_src>
import jax
import jax.numpy as jnp
from jax import lax
from jax.experimental import pallas as pl
from jax.experimental.pallas import tpu as pltpu

OBS_DIM = 11
HIDDEN = 128
FC1 = 128
BATCH = 2
SEQ = 8

D_PAD = 128   # lane-friendly input feature dim (obs_dim 11 -> 128)


def _disc_kernel(x_ref,        # (T, BB, D_PAD)  time-major input block
                 wih_ref,      # (D_PAD, 4H)     W_ih^T (zero-padded rows), f32
                 whh_ref,      # (H, 4H)         W_hh^T, bf16
                 b_ref,        # (1, 4H)         b_ih + b_hh, f32
                 w1_ref,       # (H, FC1)        fc1 weight^T
                 b1_ref,       # (1, FC1)
                 w2_ref,       # (1, FC1)        fc2 weight as a row (lane reduce)
                 b2_ref,       # (1, 1)
                 out_ref,      # (BB, 128)       lane-dense output (value bcast on lanes)
                 xproj_ref):   # (T, BB, 4H)     VMEM scratch for hoisted projection
    T, BB, DP = x_ref.shape
    H = whh_ref.shape[0]

    # ---- Hoisted input projection: one MXU call + single bias fold ----------
    x_all = x_ref[...].reshape(T * BB, DP)                        # (T*BB, D_PAD)
    xproj_ref[...] = (
        jnp.dot(x_all, wih_ref[...], preferred_element_type=jnp.float32)
        + b_ref[...]
    ).reshape(T, BB, 4 * H)

    whh = whh_ref[...]                                            # (H, 4H) bf16, loop-invariant

    # ---- Recurrent loop (fully unrolled, only h @ W_hh on the critical path) -
    def step(t, carry):
        h, c = carry
        gates = xproj_ref[t] + jnp.dot(
            h.astype(whh.dtype), whh, preferred_element_type=jnp.float32)
        # PyTorch LSTM gate ordering: i, f, g, o
        i = jax.nn.sigmoid(gates[:, 0:H])
        f = jax.nn.sigmoid(gates[:, H:2 * H])
        g = jnp.tanh(gates[:, 2 * H:3 * H])
        o = jax.nn.sigmoid(gates[:, 3 * H:4 * H])
        c_new = f * c + i * g
        h_new = o * jnp.tanh(c_new)
        return (h_new, c_new)

    h0 = jnp.zeros((BB, H), jnp.float32)
    c0 = jnp.zeros((BB, H), jnp.float32)
    h_last, _ = lax.fori_loop(0, T, step, (h0, c0), unroll=True)

    # ---- fc head: Linear -> LeakyReLU(0.2) -> (lane-reduce) Linear ----------
    z = jnp.dot(h_last, w1_ref[...], preferred_element_type=jnp.float32) + b1_ref[...]
    z = jnp.where(z > 0, z, 0.2 * z)
    out = jnp.sum(z * w2_ref[...], axis=-1, keepdims=True) + b2_ref[...]   # (BB, 1)
    out_ref[...] = jnp.broadcast_to(out, out_ref.shape)                     # lane-dense store


def _batch_tiling(B):
    """Pick (batch_block, padded_batch) so large batches shard across the grid."""
    if B <= 128:
        bb = max(8, ((B + 7) // 8) * 8)
        return bb, bb
    bb = 128
    return bb, ((B + bb - 1) // bb) * bb


def discriminator_forward(x, params):
    """x: (B, T, OBS_DIM) float32 (PyTorch batch-first). Returns (B, 1)."""
    B, T, D = x.shape
    assert D == OBS_DIM

    w_ih, w_hh, b_ih, b_hh, w1, b1, w2, b2 = params

    bb, b_pad = _batch_tiling(B)
    grid = (b_pad // bb,)

    # wrapper glue: time-major layout, zero-pad batch and feature dims via jnp.pad.
    x_tm = jnp.transpose(x, (1, 0, 2)).astype(jnp.float32)             # (T, B, D)
    x_pad = jnp.pad(x_tm, ((0, 0), (0, b_pad - B), (0, D_PAD - D)))    # (T, b_pad, D_PAD)

    wih_t = jnp.pad(w_ih.T.astype(jnp.float32), ((0, D_PAD - D), (0, 0)))   # (D_PAD, 4H)
    whh_t = w_hh.T.astype(jnp.bfloat16)                                # (H, 4H) bf16 recurrent weight
    b_all = (b_ih + b_hh).reshape(1, 4 * HIDDEN).astype(jnp.float32)

    w1_t = w1.T.astype(jnp.float32)                                    # (H, FC1)
    b1_r = b1.reshape(1, FC1).astype(jnp.float32)
    w2_r = w2.reshape(1, FC1).astype(jnp.float32)                      # fc2 weight as a row
    b2_r = b2.reshape(1, 1).astype(jnp.float32)

    grid_spec = pltpu.PrefetchScalarGridSpec(
        num_scalar_prefetch=0,
        grid=grid,
        in_specs=[
            pl.BlockSpec((T, bb, D_PAD), lambda i: (0, i, 0)),
            pl.BlockSpec((D_PAD, 4 * HIDDEN), lambda i: (0, 0)),
            pl.BlockSpec((HIDDEN, 4 * HIDDEN), lambda i: (0, 0)),
            pl.BlockSpec((1, 4 * HIDDEN), lambda i: (0, 0)),
            pl.BlockSpec((HIDDEN, FC1), lambda i: (0, 0)),
            pl.BlockSpec((1, FC1), lambda i: (0, 0)),
            pl.BlockSpec((1, FC1), lambda i: (0, 0)),
            pl.BlockSpec((1, 1), lambda i: (0, 0)),
        ],
        out_specs=pl.BlockSpec((bb, 128), lambda i: (i, 0)),
        scratch_shapes=[pltpu.VMEM((T, bb, 4 * HIDDEN), jnp.float32)],
    )

    out = pl.pallas_call(
        _disc_kernel,
        out_shape=jax.ShapeDtypeStruct((b_pad, 128), jnp.float32),
        grid_spec=grid_spec,
        compiler_params=pltpu.CompilerParams(
            dimension_semantics=("parallel",)),
    )(x_pad, wih_t, whh_t, b_all, w1_t, b1_r, w2_r, b2_r)

    return out[:B, :1]


def init_params(key):
    """Deterministic parameter init (PyTorch-style uniform ranges)."""
    ks = jax.random.split(key, 8)
    s_lstm = 1.0 / jnp.sqrt(HIDDEN)
    w_ih = jax.random.uniform(ks[0], (4 * HIDDEN, OBS_DIM), jnp.float32, -s_lstm, s_lstm)
    w_hh = jax.random.uniform(ks[1], (4 * HIDDEN, HIDDEN), jnp.float32, -s_lstm, s_lstm)
    b_ih = jax.random.uniform(ks[2], (4 * HIDDEN,), jnp.float32, -s_lstm, s_lstm)
    b_hh = jax.random.uniform(ks[3], (4 * HIDDEN,), jnp.float32, -s_lstm, s_lstm)
    s1 = 1.0 / jnp.sqrt(HIDDEN)
    w1 = jax.random.uniform(ks[4], (FC1, HIDDEN), jnp.float32, -s1, s1)
    b1 = jax.random.uniform(ks[5], (FC1,), jnp.float32, -s1, s1)
    s2 = 1.0 / jnp.sqrt(FC1)
    w2 = jax.random.uniform(ks[6], (1, FC1), jnp.float32, -s2, s2)
    b2 = jax.random.uniform(ks[7], (1,), jnp.float32, -s2, s2)
    return (w_ih, w_hh, b_ih, b_hh, w1, b1, w2, b2)


def reference_forward(x, params):
    """Pure-JAX f32 reference matching torch.nn.LSTM + fc head."""
    w_ih, w_hh, b_ih, b_hh, w1, b1, w2, b2 = params
    B, T, _ = x.shape
    H = HIDDEN
    h = jnp.zeros((B, H), jnp.float32)
    c = jnp.zeros((B, H), jnp.float32)
    for t in range(T):
        gates = x[:, t, :] @ w_ih.T + b_ih + h @ w_hh.T + b_hh
        i = jax.nn.sigmoid(gates[:, 0:H])
        f = jax.nn.sigmoid(gates[:, H:2 * H])
        g = jnp.tanh(gates[:, 2 * H:3 * H])
        o = jax.nn.sigmoid(gates[:, 3 * H:4 * H])
        c = f * c + i * g
        h = o * jnp.tanh(c)
    z = h @ w1.T + b1
    z = jnp.where(z > 0, z, 0.2 * z)
    return z @ w2.T + b2


if __name__ == "__main__":
    key = jax.random.PRNGKey(0)
    k_x, k_p = jax.random.split(key)
    x = jax.random.normal(k_x, (BATCH, SEQ, OBS_DIM), jnp.float32)
    params = init_params(k_p)

    out = discriminator_forward(x, params)
    out = jax.block_until_ready(out)

    ref = reference_forward(x, params)
    assert out.shape == (BATCH, 1)
    # Tolerance accommodates the bf16 recurrent weight (f32 accumulation); the
    # observed deviation is O(1e-3), well inside this bound.
    assert jnp.allclose(out, ref, atol=2e-2, rtol=2e-2), (out, ref)
    print("KERNEL_OK")
</pallas_src>

<mosaic_0001>
module attributes {stable_mosaic.version = 11 : i64} {
  func.func @_disc_kernel(%arg0: i32, %arg1: memref<8x8x128xf32, #tpu.memory_space<vmem>>, %arg2: memref<128x512xf32, #tpu.memory_space<vmem>>, %arg3: memref<128x512xbf16, #tpu.memory_space<vmem>>, %arg4: memref<1x512xf32, #tpu.memory_space<vmem>>, %arg5: memref<128x128xf32, #tpu.memory_space<vmem>>, %arg6: memref<1x128xf32, #tpu.memory_space<vmem>>, %arg7: memref<1x128xf32, #tpu.memory_space<vmem>>, %arg8: memref<1x1xf32, #tpu.memory_space<vmem>>, %arg9: memref<8x128xf32, #tpu.memory_space<vmem>>, %arg10: memref<8x8x512xf32, #tpu.memory_space<vmem>>) attributes {dimension_semantics = [#tpu.dimension_semantics<parallel>], iteration_bounds = array<i64: 1>, scalar_prefetch = 0 : i64, scratch_operands = 1 : i64, tpu.core_type = #tpu.core_type<tc>, window_params = [{transform_indices = @transform_0, window_bounds = array<i64: 8, 8, 128>}, {pipeline_mode = #tpu.pipeline_mode<synchronous>, transform_indices = @transform_1, window_bounds = array<i64: 128, 512>}, {pipeline_mode = #tpu.pipeline_mode<synchronous>, transform_indices = @transform_2, window_bounds = array<i64: 128, 512>}, {pipeline_mode = #tpu.pipeline_mode<synchronous>, transform_indices = @transform_3, window_bounds = array<i64: 1, 512>}, {pipeline_mode = #tpu.pipeline_mode<synchronous>, transform_indices = @transform_4, window_bounds = array<i64: 128, 128>}, {pipeline_mode = #tpu.pipeline_mode<synchronous>, transform_indices = @transform_5, window_bounds = array<i64: 1, 128>}, {pipeline_mode = #tpu.pipeline_mode<synchronous>, transform_indices = @transform_6, window_bounds = array<i64: 1, 128>}, {pipeline_mode = #tpu.pipeline_mode<synchronous>, transform_indices = @transform_7, window_bounds = array<i64: 1, 1>}, {transform_indices = @transform_8, window_bounds = array<i64: 8, 128>}]} {
    %c0 = arith.constant 0 : index
    %c0_0 = arith.constant 0 : index
    %c0_1 = arith.constant 0 : index
    %0 = vector.load %arg1[%c0, %c0_0, %c0_1] : memref<8x8x128xf32, #tpu.memory_space<vmem>>, vector<8x8x128xf32>
    %1 = vector.shape_cast %0 : vector<8x8x128xf32> to vector<64x128xf32>
    %c0_2 = arith.constant 0 : index
    %c0_3 = arith.constant 0 : index
    %2 = vector.load %arg2[%c0_2, %c0_3] : memref<128x512xf32, #tpu.memory_space<vmem>>, vector<128x512xf32>
    %cst = arith.constant dense<0.000000e+00> : vector<64x512xf32>
    %3 = tpu.matmul %1, %2, %cst {dimension_numbers = #tpu.dot_dimension_numbers<[1], [0], [0], [1], [0, 0, 1, 1], [], []>} : vector<64x128xf32>, vector<128x512xf32>, vector<64x512xf32> -> vector<64x512xf32>
    %c0_4 = arith.constant 0 : index
    %c0_5 = arith.constant 0 : index
    %4 = vector.load %arg4[%c0_4, %c0_5] : memref<1x512xf32, #tpu.memory_space<vmem>>, vector<1x512xf32>
    %5 = vector.broadcast %4 : vector<1x512xf32> to vector<64x512xf32>
    %6 = arith.addf %3, %5 : vector<64x512xf32>
    %7 = vector.shape_cast %6 : vector<64x512xf32> to vector<8x8x512xf32>
    %c0_6 = arith.constant 0 : index
    %c0_7 = arith.constant 0 : index
    %c0_8 = arith.constant 0 : index
    %8 = vector.load %arg10[%c0_6, %c0_7, %c0_8] : memref<8x8x512xf32, #tpu.memory_space<vmem>>, vector<8x8x512xf32>
    tpu.vector_store %arg10[%c0_6, %c0_7, %c0_8], %7 {strides = array<i32>} : memref<8x8x512xf32, #tpu.memory_space<vmem>>, vector<8x8x512xf32>,
    %c0_9 = arith.constant 0 : index
    %c0_10 = arith.constant 0 : index
    %9 = vector.load %arg3[%c0_9, %c0_10] : memref<128x512xbf16, #tpu.memory_space<vmem>>, vector<128x512xbf16>
    %cst_11 = arith.constant 0.000000e+00 : f32
    %10 = vector.broadcast %cst_11 : f32 to vector<8x128xf32>
    %cst_12 = arith.constant 0.000000e+00 : f32
    %11 = vector.broadcast %cst_12 : f32 to vector<8x128xf32>
    %c0_i32 = arith.constant 0 : i32
    %12 = arith.index_cast %c0_i32 : i32 to index
    %c0_13 = arith.constant 0 : index
    %c0_14 = arith.constant 0 : index
    %13 = vector.load %arg10[%12, %c0_13, %c0_14] : memref<8x8x512xf32, #tpu.memory_space<vmem>>, vector<1x8x512xf32>
    %14 = vector.shape_cast %13 : vector<1x8x512xf32> to vector<8x512xf32>
    %15 = arith.truncf %10 : vector<8x128xf32> to vector<8x128xbf16>
    %cst_15 = arith.constant dense<0.000000e+00> : vector<8x512xf32>
    %16 = tpu.matmul %15, %9, %cst_15 {dimension_numbers = #tpu.dot_dimension_numbers<[1], [0], [0], [1], [0, 0, 1, 1], [], []>} : vector<8x128xbf16>, vector<128x512xbf16>, vector<8x512xf32> -> vector<8x512xf32>
    %17 = arith.addf %14, %16 : vector<8x512xf32>
    %18 = vector.extract_strided_slice %17 {offsets = [0, 0], sizes = [8, 128], strides = [1, 1]} : vector<8x512xf32> to vector<8x128xf32>
    %19 = arith.negf %18 : vector<8x128xf32>
    %20 = math.exp %19 : vector<8x128xf32>
    %cst_16 = arith.constant 1.000000e+00 : f32
    %21 = vector.broadcast %cst_16 : f32 to vector<8x128xf32>
    %22 = arith.addf %21, %20 : vector<8x128xf32>
    %23 = arith.divf %21, %22 : vector<8x128xf32>
    %24 = vector.extract_strided_slice %17 {offsets = [0, 128], sizes = [8, 128], strides = [1, 1]} : vector<8x512xf32> to vector<8x128xf32>
    %25 = arith.negf %24 : vector<8x128xf32>
    %26 = math.exp %25 : vector<8x128xf32>
    %cst_17 = arith.constant 1.000000e+00 : f32
    %27 = vector.broadcast %cst_17 : f32 to vector<8x128xf32>
    %28 = arith.addf %27, %26 : vector<8x128xf32>
    %29 = arith.divf %27, %28 : vector<8x128xf32>
    %30 = vector.extract_strided_slice %17 {offsets = [0, 256], sizes = [8, 128], strides = [1, 1]} : vector<8x512xf32> to vector<8x128xf32>
    %31 = math.tanh %30 : vector<8x128xf32>
    %32 = vector.extract_strided_slice %17 {offsets = [0, 384], sizes = [8, 128], strides = [1, 1]} : vector<8x512xf32> to vector<8x128xf32>
    %33 = arith.negf %32 : vector<8x128xf32>
    %34 = math.exp %33 : vector<8x128xf32>
    %cst_18 = arith.constant 1.000000e+00 : f32
    %35 = vector.broadcast %cst_18 : f32 to vector<8x128xf32>
    %36 = arith.addf %35, %34 : vector<8x128xf32>
    %37 = arith.divf %35, %36 : vector<8x128xf32>
    %38 = arith.mulf %29, %11 : vector<8x128xf32>
    %39 = arith.mulf %23, %31 : vector<8x128xf32>
    %40 = arith.addf %38, %39 : vector<8x128xf32>
    %41 = math.tanh %40 : vector<8x128xf32>
    %42 = arith.mulf %37, %41 : vector<8x128xf32>
    %c1_i32 = arith.constant 1 : i32
    %43 = arith.index_cast %c1_i32 : i32 to index
    %c0_19 = arith.constant 0 : index
    %c0_20 = arith.constant 0 : index
    %44 = vector.load %arg10[%43, %c0_19, %c0_20] : memref<8x8x512xf32, #tpu.memory_space<vmem>>, vector<1x8x512xf32>
    %45 = vector.shape_cast %44 : vector<1x8x512xf32> to vector<8x512xf32>
    %46 = arith.truncf %42 : vector<8x128xf32> to vector<8x128xbf16>
    %cst_21 = arith.constant dense<0.000000e+00> : vector<8x512xf32>
    %47 = tpu.matmul %46, %9, %cst_21 {dimension_numbers = #tpu.dot_dimension_numbers<[1], [0], [0], [1], [0, 0, 1, 1], [], []>} : vector<8x128xbf16>, vector<128x512xbf16>, vector<8x512xf32> -> vector<8x512xf32>
    %48 = arith.addf %45, %47 : vector<8x512xf32>
    %49 = vector.extract_strided_slice %48 {offsets = [0, 0], sizes = [8, 128], strides = [1, 1]} : vector<8x512xf32> to vector<8x128xf32>
    %50 = arith.negf %49 : vector<8x128xf32>
    %51 = math.exp %50 : vector<8x128xf32>
    %cst_22 = arith.constant 1.000000e+00 : f32
    %52 = vector.broadcast %cst_22 : f32 to vector<8x128xf32>
    %53 = arith.addf %52, %51 : vector<8x128xf32>
    %54 = arith.divf %52, %53 : vector<8x128xf32>
    %55 = vector.extract_strided_slice %48 {offsets = [0, 128], sizes = [8, 128], strides = [1, 1]} : vector<8x512xf32> to vector<8x128xf32>
    %56 = arith.negf %55 : vector<8x128xf32>
    %57 = math.exp %56 : vector<8x128xf32>
    %cst_23 = arith.constant 1.000000e+00 : f32
    %58 = vector.broadcast %cst_23 : f32 to vector<8x128xf32>
    %59 = arith.addf %58, %57 : vector<8x128xf32>
    %60 = arith.divf %58, %59 : vector<8x128xf32>
    %61 = vector.extract_strided_slice %48 {offsets = [0, 256], sizes = [8, 128], strides = [1, 1]} : vector<8x512xf32> to vector<8x128xf32>
    %62 = math.tanh %61 : vector<8x128xf32>
    %63 = vector.extract_strided_slice %48 {offsets = [0, 384], sizes = [8, 128], strides = [1, 1]} : vector<8x512xf32> to vector<8x128xf32>
    %64 = arith.negf %63 : vector<8x128xf32>
    %65 = math.exp %64 : vector<8x128xf32>
    %cst_24 = arith.constant 1.000000e+00 : f32
    %66 = vector.broadcast %cst_24 : f32 to vector<8x128xf32>
    %67 = arith.addf %66, %65 : vector<8x128xf32>
    %68 = arith.divf %66, %67 : vector<8x128xf32>
    %69 = arith.mulf %60, %40 : vector<8x128xf32>
    %70 = arith.mulf %54, %62 : vector<8x128xf32>
    %71 = arith.addf %69, %70 : vector<8x128xf32>
    %72 = math.tanh %71 : vector<8x128xf32>
    %73 = arith.mulf %68, %72 : vector<8x128xf32>
    %c2_i32 = arith.constant 2 : i32
    %74 = arith.index_cast %c2_i32 : i32 to index
    %c0_25 = arith.constant 0 : index
    %c0_26 = arith.constant 0 : index
    %75 = vector.load %arg10[%74, %c0_25, %c0_26] : memref<8x8x512xf32, #tpu.memory_space<vmem>>, vector<1x8x512xf32>
    %76 = vector.shape_cast %75 : vector<1x8x512xf32> to vector<8x512xf32>
    %77 = arith.truncf %73 : vector<8x128xf32> to vector<8x128xbf16>
    %cst_27 = arith.constant dense<0.000000e+00> : vector<8x512xf32>
    %78 = tpu.matmul %77, %9, %cst_27 {dimension_numbers = #tpu.dot_dimension_numbers<[1], [0], [0], [1], [0, 0, 1, 1], [], []>} : vector<8x128xbf16>, vector<128x512xbf16>, vector<8x512xf32> -> vector<8x512xf32>
    %79 = arith.addf %76, %78 : vector<8x512xf32>
    %80 = vector.extract_strided_slice %79 {offsets = [0, 0], sizes = [8, 128], strides = [1, 1]} : vector<8x512xf32> to vector<8x128xf32>
    %81 = arith.negf %80 : vector<8x128xf32>
    %82 = math.exp %81 : vector<8x128xf32>
    %cst_28 = arith.constant 1.000000e+00 : f32
    %83 = vector.broadcast %cst_28 : f32 to vector<8x128xf32>
    %84 = arith.addf %83, %82 : vector<8x128xf32>
    %85 = arith.divf %83, %84 : vector<8x128xf32>
    %86 = vector.extract_strided_slice %79 {offsets = [0, 128], sizes = [8, 128], strides = [1, 1]} : vector<8x512xf32> to vector<8x128xf32>
    %87 = arith.negf %86 : vector<8x128xf32>
    %88 = math.exp %87 : vector<8x128xf32>
    %cst_29 = arith.constant 1.000000e+00 : f32
    %89 = vector.broadcast %cst_29 : f32 to vector<8x128xf32>
    %90 = arith.addf %89, %88 : vector<8x128xf32>
    %91 = arith.divf %89, %90 : vector<8x128xf32>
    %92 = vector.extract_strided_slice %79 {offsets = [0, 256], sizes = [8, 128], strides = [1, 1]} : vector<8x512xf32> to vector<8x128xf32>
    %93 = math.tanh %92 : vector<8x128xf32>
    %94 = vector.extract_strided_slice %79 {offsets = [0, 384], sizes = [8, 128], strides = [1, 1]} : vector<8x512xf32> to vector<8x128xf32>
    %95 = arith.negf %94 : vector<8x128xf32>
    %96 = math.exp %95 : vector<8x128xf32>
    %cst_30 = arith.constant 1.000000e+00 : f32
    %97 = vector.broadcast %cst_30 : f32 to vector<8x128xf32>
    %98 = arith.addf %97, %96 : vector<8x128xf32>
    %99 = arith.divf %97, %98 : vector<8x128xf32>
    %100 = arith.mulf %91, %71 : vector<8x128xf32>
    %101 = arith.mulf %85, %93 : vector<8x128xf32>
    %102 = arith.addf %100, %101 : vector<8x128xf32>
    %103 = math.tanh %102 : vector<8x128xf32>
    %104 = arith.mulf %99, %103 : vector<8x128xf32>
    %c3_i32 = arith.constant 3 : i32
    %105 = arith.index_cast %c3_i32 : i32 to index
    %c0_31 = arith.constant 0 : index
    %c0_32 = arith.constant 0 : index
    %106 = vector.load %arg10[%105, %c0_31, %c0_32] : memref<8x8x512xf32, #tpu.memory_space<vmem>>, vector<1x8x512xf32>
    %107 = vector.shape_cast %106 : vector<1x8x512xf32> to vector<8x512xf32>
    %108 = arith.truncf %104 : vector<8x128xf32> to vector<8x128xbf16>
    %cst_33 = arith.constant dense<0.000000e+00> : vector<8x512xf32>
    %109 = tpu.matmul %108, %9, %cst_33 {dimension_numbers = #tpu.dot_dimension_numbers<[1], [0], [0], [1], [0, 0, 1, 1], [], []>} : vector<8x128xbf16>, vector<128x512xbf16>, vector<8x512xf32> -> vector<8x512xf32>
    %110 = arith.addf %107, %109 : vector<8x512xf32>
    %111 = vector.extract_strided_slice %110 {offsets = [0, 0], sizes = [8, 128], strides = [1, 1]} : vector<8x512xf32> to vector<8x128xf32>
    %112 = arith.negf %111 : vector<8x128xf32>
    %113 = math.exp %112 : vector<8x128xf32>
    %cst_34 = arith.constant 1.000000e+00 : f32
    %114 = vector.broadcast %cst_34 : f32 to vector<8x128xf32>
    %115 = arith.addf %114, %113 : vector<8x128xf32>
    %116 = arith.divf %114, %115 : vector<8x128xf32>
    %117 = vector.extract_strided_slice %110 {offsets = [0, 128], sizes = [8, 128], strides = [1, 1]} : vector<8x512xf32> to vector<8x128xf32>
    %118 = arith.negf %117 : vector<8x128xf32>
    %119 = math.exp %118 : vector<8x128xf32>
    %cst_35 = arith.constant 1.000000e+00 : f32
    %120 = vector.broadcast %cst_35 : f32 to vector<8x128xf32>
    %121 = arith.addf %120, %119 : vector<8x128xf32>
    %122 = arith.divf %120, %121 : vector<8x128xf32>
    %123 = vector.extract_strided_slice %110 {offsets = [0, 256], sizes = [8, 128], strides = [1, 1]} : vector<8x512xf32> to vector<8x128xf32>
    %124 = math.tanh %123 : vector<8x128xf32>
    %125 = vector.extract_strided_slice %110 {offsets = [0, 384], sizes = [8, 128], strides = [1, 1]} : vector<8x512xf32> to vector<8x128xf32>
    %126 = arith.negf %125 : vector<8x128xf32>
    %127 = math.exp %126 : vector<8x128xf32>
    %cst_36 = arith.constant 1.000000e+00 : f32
    %128 = vector.broadcast %cst_36 : f32 to vector<8x128xf32>
    %129 = arith.addf %128, %127 : vector<8x128xf32>
    %130 = arith.divf %128, %129 : vector<8x128xf32>
    %131 = arith.mulf %122, %102 : vector<8x128xf32>
    %132 = arith.mulf %116, %124 : vector<8x128xf32>
    %133 = arith.addf %131, %132 : vector<8x128xf32>
    %134 = math.tanh %133 : vector<8x128xf32>
    %135 = arith.mulf %130, %134 : vector<8x128xf32>
    %c4_i32 = arith.constant 4 : i32
    %136 = arith.index_cast %c4_i32 : i32 to index
    %c0_37 = arith.constant 0 : index
    %c0_38 = arith.constant 0 : index
    %137 = vector.load %arg10[%136, %c0_37, %c0_38] : memref<8x8x512xf32, #tpu.memory_space<vmem>>, vector<1x8x512xf32>
    %138 = vector.shape_cast %137 : vector<1x8x512xf32> to vector<8x512xf32>
    %139 = arith.truncf %135 : vector<8x128xf32> to vector<8x128xbf16>
    %cst_39 = arith.constant dense<0.000000e+00> : vector<8x512xf32>
    %140 = tpu.matmul %139, %9, %cst_39 {dimension_numbers = #tpu.dot_dimension_numbers<[1], [0], [0], [1], [0, 0, 1, 1], [], []>} : vector<8x128xbf16>, vector<128x512xbf16>, vector<8x512xf32> -> vector<8x512xf32>
    %141 = arith.addf %138, %140 : vector<8x512xf32>
    %142 = vector.extract_strided_slice %141 {offsets = [0, 0], sizes = [8, 128], strides = [1, 1]} : vector<8x512xf32> to vector<8x128xf32>
    %143 = arith.negf %142 : vector<8x128xf32>
    %144 = math.exp %143 : vector<8x128xf32>
    %cst_40 = arith.constant 1.000000e+00 : f32
    %145 = vector.broadcast %cst_40 : f32 to vector<8x128xf32>
    %146 = arith.addf %145, %144 : vector<8x128xf32>
    %147 = arith.divf %145, %146 : vector<8x128xf32>
    %148 = vector.extract_strided_slice %141 {offsets = [0, 128], sizes = [8, 128], strides = [1, 1]} : vector<8x512xf32> to vector<8x128xf32>
    %149 = arith.negf %148 : vector<8x128xf32>
    %150 = math.exp %149 : vector<8x128xf32>
    %cst_41 = arith.constant 1.000000e+00 : f32
    %151 = vector.broadcast %cst_41 : f32 to vector<8x128xf32>
    %152 = arith.addf %151, %150 : vector<8x128xf32>
    %153 = arith.divf %151, %152 : vector<8x128xf32>
    %154 = vector.extract_strided_slice %141 {offsets = [0, 256], sizes = [8, 128], strides = [1, 1]} : vector<8x512xf32> to vector<8x128xf32>
    %155 = math.tanh %154 : vector<8x128xf32>
    %156 = vector.extract_strided_slice %141 {offsets = [0, 384], sizes = [8, 128], strides = [1, 1]} : vector<8x512xf32> to vector<8x128xf32>
    %157 = arith.negf %156 : vector<8x128xf32>
    %158 = math.exp %157 : vector<8x128xf32>
    %cst_42 = arith.constant 1.000000e+00 : f32
    %159 = vector.broadcast %cst_42 : f32 to vector<8x128xf32>
    %160 = arith.addf %159, %158 : vector<8x128xf32>
    %161 = arith.divf %159, %160 : vector<8x128xf32>
    %162 = arith.mulf %153, %133 : vector<8x128xf32>
    %163 = arith.mulf %147, %155 : vector<8x128xf32>
    %164 = arith.addf %162, %163 : vector<8x128xf32>
    %165 = math.tanh %164 : vector<8x128xf32>
    %166 = arith.mulf %161, %165 : vector<8x128xf32>
    %c5_i32 = arith.constant 5 : i32
    %167 = arith.index_cast %c5_i32 : i32 to index
    %c0_43 = arith.constant 0 : index
    %c0_44 = arith.constant 0 : index
    %168 = vector.load %arg10[%167, %c0_43, %c0_44] : memref<8x8x512xf32, #tpu.memory_space<vmem>>, vector<1x8x512xf32>
    %169 = vector.shape_cast %168 : vector<1x8x512xf32> to vector<8x512xf32>
    %170 = arith.truncf %166 : vector<8x128xf32> to vector<8x128xbf16>
    %cst_45 = arith.constant dense<0.000000e+00> : vector<8x512xf32>
    %171 = tpu.matmul %170, %9, %cst_45 {dimension_numbers = #tpu.dot_dimension_numbers<[1], [0], [0], [1], [0, 0, 1, 1], [], []>} : vector<8x128xbf16>, vector<128x512xbf16>, vector<8x512xf32> -> vector<8x512xf32>
    %172 = arith.addf %169, %171 : vector<8x512xf32>
    %173 = vector.extract_strided_slice %172 {offsets = [0, 0], sizes = [8, 128], strides = [1, 1]} : vector<8x512xf32> to vector<8x128xf32>
    %174 = arith.negf %173 : vector<8x128xf32>
    %175 = math.exp %174 : vector<8x128xf32>
    %cst_46 = arith.constant 1.000000e+00 : f32
    %176 = vector.broadcast %cst_46 : f32 to vector<8x128xf32>
    %177 = arith.addf %176, %175 : vector<8x128xf32>
    %178 = arith.divf %176, %177 : vector<8x128xf32>
    %179 = vector.extract_strided_slice %172 {offsets = [0, 128], sizes = [8, 128], strides = [1, 1]} : vector<8x512xf32> to vector<8x128xf32>
    %180 = arith.negf %179 : vector<8x128xf32>
    %181 = math.exp %180 : vector<8x128xf32>
    %cst_47 = arith.constant 1.000000e+00 : f32
    %182 = vector.broadcast %cst_47 : f32 to vector<8x128xf32>
    %183 = arith.addf %182, %181 : vector<8x128xf32>
    %184 = arith.divf %182, %183 : vector<8x128xf32>
    %185 = vector.extract_strided_slice %172 {offsets = [0, 256], sizes = [8, 128], strides = [1, 1]} : vector<8x512xf32> to vector<8x128xf32>
    %186 = math.tanh %185 : vector<8x128xf32>
    %187 = vector.extract_strided_slice %172 {offsets = [0, 384], sizes = [8, 128], strides = [1, 1]} : vector<8x512xf32> to vector<8x128xf32>
    %188 = arith.negf %187 : vector<8x128xf32>
    %189 = math.exp %188 : vector<8x128xf32>
    %cst_48 = arith.constant 1.000000e+00 : f32
    %190 = vector.broadcast %cst_48 : f32 to vector<8x128xf32>
    %191 = arith.addf %190, %189 : vector<8x128xf32>
    %192 = arith.divf %190, %191 : vector<8x128xf32>
    %193 = arith.mulf %184, %164 : vector<8x128xf32>
    %194 = arith.mulf %178, %186 : vector<8x128xf32>
    %195 = arith.addf %193, %194 : vector<8x128xf32>
    %196 = math.tanh %195 : vector<8x128xf32>
    %197 = arith.mulf %192, %196 : vector<8x128xf32>
    %c6_i32 = arith.constant 6 : i32
    %198 = arith.index_cast %c6_i32 : i32 to index
    %c0_49 = arith.constant 0 : index
    %c0_50 = arith.constant 0 : index
    %199 = vector.load %arg10[%198, %c0_49, %c0_50] : memref<8x8x512xf32, #tpu.memory_space<vmem>>, vector<1x8x512xf32>
    %200 = vector.shape_cast %199 : vector<1x8x512xf32> to vector<8x512xf32>
    %201 = arith.truncf %197 : vector<8x128xf32> to vector<8x128xbf16>
    %cst_51 = arith.constant dense<0.000000e+00> : vector<8x512xf32>
    %202 = tpu.matmul %201, %9, %cst_51 {dimension_numbers = #tpu.dot_dimension_numbers<[1], [0], [0], [1], [0, 0, 1, 1], [], []>} : vector<8x128xbf16>, vector<128x512xbf16>, vector<8x512xf32> -> vector<8x512xf32>
    %203 = arith.addf %200, %202 : vector<8x512xf32>
    %204 = vector.extract_strided_slice %203 {offsets = [0, 0], sizes = [8, 128], strides = [1, 1]} : vector<8x512xf32> to vector<8x128xf32>
    %205 = arith.negf %204 : vector<8x128xf32>
    %206 = math.exp %205 : vector<8x128xf32>
    %cst_52 = arith.constant 1.000000e+00 : f32
    %207 = vector.broadcast %cst_52 : f32 to vector<8x128xf32>
    %208 = arith.addf %207, %206 : vector<8x128xf32>
    %209 = arith.divf %207, %208 : vector<8x128xf32>
    %210 = vector.extract_strided_slice %203 {offsets = [0, 128], sizes = [8, 128], strides = [1, 1]} : vector<8x512xf32> to vector<8x128xf32>
    %211 = arith.negf %210 : vector<8x128xf32>
    %212 = math.exp %211 : vector<8x128xf32>
    %cst_53 = arith.constant 1.000000e+00 : f32
    %213 = vector.broadcast %cst_53 : f32 to vector<8x128xf32>
    %214 = arith.addf %213, %212 : vector<8x128xf32>
    %215 = arith.divf %213, %214 : vector<8x128xf32>
    %216 = vector.extract_strided_slice %203 {offsets = [0, 256], sizes = [8, 128], strides = [1, 1]} : vector<8x512xf32> to vector<8x128xf32>
    %217 = math.tanh %216 : vector<8x128xf32>
    %218 = vector.extract_strided_slice %203 {offsets = [0, 384], sizes = [8, 128], strides = [1, 1]} : vector<8x512xf32> to vector<8x128xf32>
    %219 = arith.negf %218 : vector<8x128xf32>
    %220 = math.exp %219 : vector<8x128xf32>
    %cst_54 = arith.constant 1.000000e+00 : f32
    %221 = vector.broadcast %cst_54 : f32 to vector<8x128xf32>
    %222 = arith.addf %221, %220 : vector<8x128xf32>
    %223 = arith.divf %221, %222 : vector<8x128xf32>
    %224 = arith.mulf %215, %195 : vector<8x128xf32>
    %225 = arith.mulf %209, %217 : vector<8x128xf32>
    %226 = arith.addf %224, %225 : vector<8x128xf32>
    %227 = math.tanh %226 : vector<8x128xf32>
    %228 = arith.mulf %223, %227 : vector<8x128xf32>
    %c7_i32 = arith.constant 7 : i32
    %229 = arith.index_cast %c7_i32 : i32 to index
    %c0_55 = arith.constant 0 : index
    %c0_56 = arith.constant 0 : index
    %230 = vector.load %arg10[%229, %c0_55, %c0_56] : memref<8x8x512xf32, #tpu.memory_space<vmem>>, vector<1x8x512xf32>
    %231 = vector.shape_cast %230 : vector<1x8x512xf32> to vector<8x512xf32>
    %232 = arith.truncf %228 : vector<8x128xf32> to vector<8x128xbf16>
    %cst_57 = arith.constant dense<0.000000e+00> : vector<8x512xf32>
    %233 = tpu.matmul %232, %9, %cst_57 {dimension_numbers = #tpu.dot_dimension_numbers<[1], [0], [0], [1], [0, 0, 1, 1], [], []>} : vector<8x128xbf16>, vector<128x512xbf16>, vector<8x512xf32> -> vector<8x512xf32>
    %234 = arith.addf %231, %233 : vector<8x512xf32>
    %235 = vector.extract_strided_slice %234 {offsets = [0, 0], sizes = [8, 128], strides = [1, 1]} : vector<8x512xf32> to vector<8x128xf32>
    %236 = arith.negf %235 : vector<8x128xf32>
    %237 = math.exp %236 : vector<8x128xf32>
    %cst_58 = arith.constant 1.000000e+00 : f32
    %238 = vector.broadcast %cst_58 : f32 to vector<8x128xf32>
    %239 = arith.addf %238, %237 : vector<8x128xf32>
    %240 = arith.divf %238, %239 : vector<8x128xf32>
    %241 = vector.extract_strided_slice %234 {offsets = [0, 128], sizes = [8, 128], strides = [1, 1]} : vector<8x512xf32> to vector<8x128xf32>
    %242 = arith.negf %241 : vector<8x128xf32>
    %243 = math.exp %242 : vector<8x128xf32>
    %cst_59 = arith.constant 1.000000e+00 : f32
    %244 = vector.broadcast %cst_59 : f32 to vector<8x128xf32>
    %245 = arith.addf %244, %243 : vector<8x128xf32>
    %246 = arith.divf %244, %245 : vector<8x128xf32>
    %247 = vector.extract_strided_slice %234 {offsets = [0, 256], sizes = [8, 128], strides = [1, 1]} : vector<8x512xf32> to vector<8x128xf32>
    %248 = math.tanh %247 : vector<8x128xf32>
    %249 = vector.extract_strided_slice %234 {offsets = [0, 384], sizes = [8, 128], strides = [1, 1]} : vector<8x512xf32> to vector<8x128xf32>
    %250 = arith.negf %249 : vector<8x128xf32>
    %251 = math.exp %250 : vector<8x128xf32>
    %cst_60 = arith.constant 1.000000e+00 : f32
    %252 = vector.broadcast %cst_60 : f32 to vector<8x128xf32>
    %253 = arith.addf %252, %251 : vector<8x128xf32>
    %254 = arith.divf %252, %253 : vector<8x128xf32>
    %255 = arith.mulf %246, %226 : vector<8x128xf32>
    %256 = arith.mulf %240, %248 : vector<8x128xf32>
    %257 = arith.addf %255, %256 : vector<8x128xf32>
    %258 = math.tanh %257 : vector<8x128xf32>
    %259 = arith.mulf %254, %258 : vector<8x128xf32>
    %c8_i32 = arith.constant 8 : i32
    %c0_61 = arith.constant 0 : index
    %c0_62 = arith.constant 0 : index
    %260 = vector.load %arg5[%c0_61, %c0_62] : memref<128x128xf32, #tpu.memory_space<vmem>>, vector<128x128xf32>
    %cst_63 = arith.constant dense<0.000000e+00> : vector<8x128xf32>
    %261 = tpu.matmul %259, %260, %cst_63 {dimension_numbers = #tpu.dot_dimension_numbers<[1], [0], [0], [1], [0, 0, 1, 1], [], []>} : vector<8x128xf32>, vector<128x128xf32>, vector<8x128xf32> -> vector<8x128xf32>
    %c0_64 = arith.constant 0 : index
    %c0_65 = arith.constant 0 : index
    %262 = vector.load %arg6[%c0_64, %c0_65] : memref<1x128xf32, #tpu.memory_space<vmem>>, vector<1x128xf32>
    %263 = vector.broadcast %262 : vector<1x128xf32> to vector<8x128xf32>
    %264 = arith.addf %261, %263 : vector<8x128xf32>
    %cst_66 = arith.constant 0.000000e+00 : f32
    %265 = vector.broadcast %cst_66 : f32 to vector<8x128xf32>
    %266 = arith.cmpf ogt, %264, %265 : vector<8x128xf32>
    %cst_67 = arith.constant 2.000000e-01 : f32
    %267 = vector.broadcast %cst_67 : f32 to vector<8x128xf32>
    %268 = arith.mulf %267, %264 : vector<8x128xf32>
    %269 = arith.select %266, %264, %268 : vector<8x128xi1>, vector<8x128xf32>
    %c0_68 = arith.constant 0 : index
    %c0_69 = arith.constant 0 : index
    %270 = vector.load %arg7[%c0_68, %c0_69] : memref<1x128xf32, #tpu.memory_space<vmem>>, vector<1x128xf32>
    %271 = vector.broadcast %270 : vector<1x128xf32> to vector<8x128xf32>
    %272 = arith.mulf %269, %271 : vector<8x128xf32>
    %cst_70 = arith.constant dense<0.000000e+00> : vector<8xf32>
    %273 = vector.multi_reduction <add>, %272, %cst_70 [1] : vector<8x128xf32> to vector<8xf32>
    %274 = vector.shape_cast %273 : vector<8xf32> to vector<8x1xf32>
    %c0_71 = arith.constant 0 : index
    %c0_72 = arith.constant 0 : index
    %275 = vector.load %arg8[%c0_71, %c0_72] : memref<1x1xf32, #tpu.memory_space<vmem>>, vector<1x1xf32>
    %276 = vector.broadcast %275 : vector<1x1xf32> to vector<8x1xf32>
    %277 = arith.addf %274, %276 : vector<8x1xf32>
    %278 = vector.shape_cast %277 : vector<8x1xf32> to vector<8x1xf32>
    %279 = vector.broadcast %278 : vector<8x1xf32> to vector<8x128xf32>
    %c0_73 = arith.constant 0 : index
    %c0_74 = arith.constant 0 : index
    %280 = vector.load %arg9[%c0_73, %c0_74] : memref<8x128xf32, #tpu.memory_space<vmem>>, vector<8x128xf32>
    tpu.vector_store %arg9[%c0_73, %c0_74], %279 {strides = array<i32>} : memref<8x128xf32, #tpu.memory_space<vmem>>, vector<8x128xf32>,
    return
  }
  func.func @transform_0(%arg0: i32) -> (i32, i32, i32) {
    %c0_i32 = arith.constant 0 : i32
    %c0_i32_0 = arith.constant 0 : i32
    %c0_i32_1 = arith.constant 0 : i32
    return %c0_i32, %arg0, %c0_i32_0 : i32, i32, i32
  }
  func.func @transform_1(%arg0: i32) -> (i32, i32) {
    %c0_i32 = arith.constant 0 : i32
    %c0_i32_0 = arith.constant 0 : i32
    %c0_i32_1 = arith.constant 0 : i32
    return %c0_i32, %c0_i32_0 : i32, i32
  }
  func.func @transform_2(%arg0: i32) -> (i32, i32) {
    %c0_i32 = arith.constant 0 : i32
    %c0_i32_0 = arith.constant 0 : i32
    %c0_i32_1 = arith.constant 0 : i32
    return %c0_i32, %c0_i32_0 : i32, i32
  }
  func.func @transform_3(%arg0: i32) -> (i32, i32) {
    %c0_i32 = arith.constant 0 : i32
    %c0_i32_0 = arith.constant 0 : i32
    %c0_i32_1 = arith.constant 0 : i32
    return %c0_i32, %c0_i32_0 : i32, i32
  }
  func.func @transform_4(%arg0: i32) -> (i32, i32) {
    %c0_i32 = arith.constant 0 : i32
    %c0_i32_0 = arith.constant 0 : i32
    %c0_i32_1 = arith.constant 0 : i32
    return %c0_i32, %c0_i32_0 : i32, i32
  }
  func.func @transform_5(%arg0: i32) -> (i32, i32) {
    %c0_i32 = arith.constant 0 : i32
    %c0_i32_0 = arith.constant 0 : i32
    %c0_i32_1 = arith.constant 0 : i32
    return %c0_i32, %c0_i32_0 : i32, i32
  }
  func.func @transform_6(%arg0: i32) -> (i32, i32) {
    %c0_i32 = arith.constant 0 : i32
    %c0_i32_0 = arith.constant 0 : i32
    %c0_i32_1 = arith.constant 0 : i32
    return %c0_i32, %c0_i32_0 : i32, i32
  }
  func.func @transform_7(%arg0: i32) -> (i32, i32) {
    %c0_i32 = arith.constant 0 : i32
    %c0_i32_0 = arith.constant 0 : i32
    %c0_i32_1 = arith.constant 0 : i32
    return %c0_i32, %c0_i32_0 : i32, i32
  }
  func.func @transform_8(%arg0: i32) -> (i32, i32) {
    %c0_i32 = arith.constant 0 : i32
    %c0_i32_0 = arith.constant 0 : i32
    return %arg0, %c0_i32 : i32, i32
  }
}

</mosaic_0001>

<bundles_post_ra>
// kernel: tpu_custom_call.1
= control target key start
LH: loop header
LB: loop body
LE: loop exit
PB: predicated region body
PF: predicated region fallthrough
CT: control target
= control target key end

     0   :  { %s2779_s0 = inlined_call_operand.hbm [shape: f32[8,8,128], index: 0, kind: input, shape index: {}]   ;;  %s2780_s1 = inlined_call_operand.hbm [shape: f32[128,512], index: 1, kind: input, shape index: {}]   ;;  %s2781_s2 = inlined_call_operand.hbm [shape: bf16[128,512], index: 2, kind: input, shape index: {}]   ;;  %s2782_s3 = inlined_call_operand.vmem [shape: f32[1,512], index: 3, kind: input, shape index: {}]   ;;  %s2783_s4 = inlined_call_operand.hbm [shape: f32[128,128], index: 4, kind: input, shape index: {}]   ;;  %s2784_s5 = inlined_call_operand.vmem [shape: f32[1,128], index: 5, kind: input, shape index: {}]   ;;  %s2785_s6 = inlined_call_operand.vmem [shape: f32[1,128], index: 6, kind: input, shape index: {}]   ;;  %s2786_s7 = inlined_call_operand.<no memory space> [shape: f32[1,1], index: 7, kind: input, shape index: {}]   ;;  %s2787_s8 = inlined_call_operand.hbm [shape: f32[8,128], index: 8, kind: output, shape index: {}]  }
   0x1   :  { %v13_v0 = vstv %s2786_s7 }
   0x2   :  { %14 = vst [vmem:[#allocation3] sm:$0x1] %v13_v0 }
   0x3   :  { %15 = vsyncpa [#allocation5], 0 }
   0x4   :  { %16 = vsyncpa [#allocation8], 0 }
   0x5   :  { %17 = vsyncpa [#allocation11], 0 }
   0x6   :  { %18 = vsyncpa [#allocation6], 0  ;;  %s2137_s29 = smov [#allocation7]  }
   0x7   :  { %s36_s30 = sshll.u32 %s2137_s29, 4  ;;  %s37_s30 = int_to_ptr.vmem [resolvable:$true] %s36_s30 }
   0x8   :  { %s2037_s9 = scalar_lea.vmem %s37_s30, 8192  ;;  %p2042_p1 = scmp.lt.s32.totalorder %s37_s30, %s37_s30 }
   0x9   :  { %p2038_p0 = scmp.ne.s32.totalorder %s37_s30, %s2037_s9  ;;  %p2043_p2 = scmp.lt.s32.totalorder %s2037_s9, %s2037_s9 }
   0xb   :  { %p2044_p3 = por %p2043_p2, %p2042_p1 }
   0xd   :  { %p2045_p4 = pnand %p2044_p3, %p2038_p0 }
   0xf   :  { %2048 = shalt.err (!%p2045_p4)
}
  0x10   :  { %s2138_s10 = smov 512   ;;  %s2139_s11 = smov 32  }
  0x11   :  { %42 = dma.hbm_to_vmem [thread:$0]  %s2780_s1, 8192, %s37_s30, [#allocation8], %s2138_s10, %s2138_s10, %s2139_s11  }
  0x12   :  { %s2140_s7 = smov [#allocation4]  }
  0x13   :  { %s24_s14 = sshll.u32 %s2140_s7, 4  ;;  %s25_s14 = int_to_ptr.vmem [resolvable:$true] %s24_s14 }
  0x14   :  { %s2057_s15 = scalar_lea.vmem %s25_s14, 1024  ;;  %p2062_p6 = scmp.lt.s32.totalorder %s25_s14, %s25_s14 }
  0x15   :  { %p2058_p5 = scmp.ne.s32.totalorder %s25_s14, %s2057_s15  ;;  %p2063_p7 = scmp.lt.s32.totalorder %s2057_s15, %s2057_s15 }
  0x17   :  { %p2064_p8 = por %p2063_p7, %p2062_p6 }
  0x19   :  { %p2065_p9 = pnand %p2064_p8, %p2058_p5 }
  0x1b   :  { %2068 = shalt.err (!%p2065_p9)
}
  0x1c   :  { %s2141_s16 = smov 128   ;;  %s2142_s17 = smov 8  }
  0x1d   :  { %30 = dma.hbm_to_vmem [thread:$0]  %s2779_s0, 1024, %s25_s14, [#allocation5], %s2141_s16, %s2141_s16, %s2142_s17  }
  0x1e   :  { %s2143_s20 = smov [#allocation9]  }
  0x1f   :  { %s48_s21 = sshll.u32 %s2143_s20, 4  ;;  %s49_s21 = int_to_ptr.vmem [resolvable:$true] %s48_s21 }
  0x20   :  { %s2077_s1 = scalar_lea.vmem %s49_s21, 4096  ;;  %p2082_p11 = scmp.lt.s32.totalorder %s49_s21, %s49_s21 }
  0x21   :  { %p2078_p10 = scmp.ne.s32.totalorder %s49_s21, %s2077_s1  ;;  %p2083_p12 = scmp.lt.s32.totalorder %s2077_s1, %s2077_s1 }
  0x23   :  { %p2084_p13 = por %p2083_p12, %p2082_p11 }
  0x25   :  { %p2085_p0 = pnand %p2084_p13, %p2078_p10 }
  0x27   :  { %2088 = shalt.err (!%p2085_p0)
}
  0x28   :  { %s2144_s22 = smov 256   ;;  %s2145_s23 = smov 16  }
  0x29   :  { %54 = dma.hbm_to_vmem [thread:$0]  %s2781_s2, 4096, %s49_s21, [#allocation8], %s2144_s22, %s2144_s22, %s2145_s23  }
  0x2a   :  { %s2146_s26 = smov [#allocation10]  }
  0x2b   :  { %s62_s27 = sshll.u32 %s2146_s26, 4  ;;  %s63_s27 = int_to_ptr.vmem [resolvable:$true] %s62_s27 }
  0x2c   :  { %s2097_s0 = scalar_lea.vmem %s63_s27, 2048  ;;  %p2102_p2 = scmp.lt.s32.totalorder %s63_s27, %s63_s27 }
  0x2d   :  { %p2098_p1 = scmp.ne.s32.totalorder %s63_s27, %s2097_s0  ;;  %p2103_p3 = scmp.lt.s32.totalorder %s2097_s0, %s2097_s0 }
  0x2f   :  { %p2104_p4 = por %p2103_p3, %p2102_p2 }
  0x31   :  { %p2105_p5 = pnand %p2104_p4, %p2098_p1 }
  0x33   :  { %2108 = shalt.err (!%p2105_p5)
}
  0x34   :  { %68 = dma.hbm_to_vmem [thread:$0]  %s2783_s4, 2048, %s63_s27, [#allocation11], %s2141_s16, %s2141_s16, %s2142_s17  }
  0x35   :  { %2129 = dma.done.wait [#allocation5], 1024  }
  0x36   :  { %2130 = vsyncadd [#allocation5], 4294966272 }
  0x37   :  { %2131 = dma.done.wait [#allocation8], 12288  }
  0x38   :  { %2132 = vsyncadd [#allocation8], 4294955008 }
  0x39   :  { %2133 = dma.done.wait [#allocation11], 2048  }
  0x3a   :  { %2134 = vsyncadd [#allocation11], 4294965248  ;;  %v2788_v1 = vmov 0.0   ;;  %v2790_v2 = vmov 0   ;;  %v157_v3 = vld [vmem:[#allocation7 + $0x1e8] sm:$0xff]  ;;  %v159_v4 = vld [vmem:[#allocation7 + $0x1f8] sm:$0xff] }
  0x3b   :  { %246 = vmatprep.mubr.f32.mxu0 %v2788_v1  ;;  %359 = vmatprep.mubr.f32.mxu1 %v2788_v1  ;;  %v156_v5 = vld [vmem:[#allocation7 + $0x1e0] sm:$0xff]  ;;  %v158_v6 = vld [vmem:[#allocation7 + $0x1f0] sm:$0xff]  ;;  %v153_v7 = vld [vmem:[#allocation7 + $0x1c8] sm:$0xff]  ;;  %vm2149_vm0 = vmmov 0   ;;  %s2150_s11 = smov [#allocation12]  }
  0x3c   :  { %1820 = vset.pattern.permute.xlu0 %v2790_v2  ;;  %182 = vmatprep.subr.mxu0 %v157_v3  ;;  %v155_v8 = vld [vmem:[#allocation7 + $0x1d8] sm:$0xff]  ;;  %v152_v9 = vld [vmem:[#allocation7 + $0x1c0] sm:$0xff]  ;;  %v154_v10 = vld [vmem:[#allocation7 + $0x1d0] sm:$0xff]  ;;  %s1684_s12 = sshll.u32 %s2150_s11, 4  ;;  %s1685_s12 = int_to_ptr.vmem [resolvable:$true] %s1684_s12 }
  0x3d   :  { %295 = vmatprep.subr.mxu1 %v159_v4  ;;  %183 = vmatpush1.msra.mxu0 %v156_v5  ;;  %v149_v11 = vld [vmem:[#allocation7 + $0x1a8] sm:$0xff]  ;;  %v151_v12 = vld [vmem:[#allocation7 + $0x1b8] sm:$0xff]  ;;  %v148_v13 = vld [vmem:[#allocation7 + $0x1a0] sm:$0xff]  ;;  %p2114_p7 = scmp.lt.s32.totalorder %s1685_s12, %s1685_s12 }
  0x3e   :  { %296 = vmatpush1.msra.mxu1 %v158_v6  ;;  %184 = vmatprep.subr.mxu0 %v153_v7  ;;  %v150_v14 = vld [vmem:[#allocation7 + $0x1b0] sm:$0xff]  ;;  %v145_v15 = vld [vmem:[#allocation7 + $0x188] sm:$0xff]  ;;  %v147_v16 = vld [vmem:[#allocation7 + $0x198] sm:$0xff] }
  0x3f   :  { %297 = vmatprep.subr.mxu1 %v155_v8  ;;  %185 = vmatpush1.msra.mxu0 %v152_v9  ;;  %v144_v17 = vld [vmem:[#allocation7 + $0x180] sm:$0xff]  ;;  %v146_v18 = vld [vmem:[#allocation7 + $0x190] sm:$0xff]  ;;  %v141_v19 = vld [vmem:[#allocation7 + $0x168] sm:$0xff] }
  0x40   :  { %298 = vmatpush1.msra.mxu1 %v154_v10  ;;  %186 = vmatprep.subr.mxu0 %v149_v11  ;;  %v143_v20 = vld [vmem:[#allocation7 + $0x178] sm:$0xff]  ;;  %v140_v21 = vld [vmem:[#allocation7 + $0x160] sm:$0xff]  ;;  %v142_v22 = vld [vmem:[#allocation7 + $0x170] sm:$0xff] }
  0x41   :  { %299 = vmatprep.subr.mxu1 %v151_v12  ;;  %187 = vmatpush1.msra.mxu0 %v148_v13  ;;  %v137_v23 = vld [vmem:[#allocation7 + $0x148] sm:$0xff]  ;;  %v139_v24 = vld [vmem:[#allocation7 + $0x158] sm:$0xff]  ;;  %v136_v25 = vld [vmem:[#allocation7 + $0x140] sm:$0xff] }
  0x42   :  { %300 = vmatpush1.msra.mxu1 %v150_v14  ;;  %188 = vmatprep.subr.mxu0 %v145_v15  ;;  %v138_v26 = vld [vmem:[#allocation7 + $0x150] sm:$0xff]  ;;  %v133_v27 = vld [vmem:[#allocation7 + $0x128] sm:$0xff]  ;;  %v135_v28 = vld [vmem:[#allocation7 + $0x138] sm:$0xff] }
  0x43   :  { %301 = vmatprep.subr.mxu1 %v147_v16  ;;  %189 = vmatpush1.msra.mxu0 %v144_v17  ;;  %v132_v29 = vld [vmem:[#allocation7 + $0x120] sm:$0xff]  ;;  %v134_v30 = vld [vmem:[#allocation7 + $0x130] sm:$0xff]  ;;  %v129_v31 = vld [vmem:[#allocation7 + $0x108] sm:$0xff] }
  0x44   :  { %302 = vmatpush1.msra.mxu1 %v146_v18  ;;  %190 = vmatprep.subr.mxu0 %v141_v19  ;;  %v131_v32 = vld [vmem:[#allocation7 + $0x118] sm:$0xff]  ;;  %v128_v33 = vld [vmem:[#allocation7 + $0x100] sm:$0xff]  ;;  %v130_v34 = vld [vmem:[#allocation7 + $0x110] sm:$0xff] }
  0x45   :  { %303 = vmatprep.subr.mxu1 %v143_v20  ;;  %191 = vmatpush1.msra.mxu0 %v140_v21  ;;  %v125_v35 = vld [vmem:[#allocation7 + $0xe8] sm:$0xff]  ;;  %v127_v36 = vld [vmem:[#allocation7 + $0xf8] sm:$0xff]  ;;  %v124_v37 = vld [vmem:[#allocation7 + $0xe0] sm:$0xff] }
  0x46   :  { %304 = vmatpush1.msra.mxu1 %v142_v22  ;;  %192 = vmatprep.subr.mxu0 %v137_v23  ;;  %v126_v38 = vld [vmem:[#allocation7 + $0xf0] sm:$0xff]  ;;  %v121_v39 = vld [vmem:[#allocation7 + $0xc8] sm:$0xff]  ;;  %v123_v40 = vld [vmem:[#allocation7 + $0xd8] sm:$0xff] }
  0x47   :  { %305 = vmatprep.subr.mxu1 %v139_v24  ;;  %193 = vmatpush1.msra.mxu0 %v136_v25  ;;  %v120_v41 = vld [vmem:[#allocation7 + $0xc0] sm:$0xff]  ;;  %v122_v42 = vld [vmem:[#allocation7 + $0xd0] sm:$0xff]  ;;  %v117_v43 = vld [vmem:[#allocation7 + $0xa8] sm:$0xff] }
  0x48   :  { %306 = vmatpush1.msra.mxu1 %v138_v26  ;;  %194 = vmatprep.subr.mxu0 %v133_v27  ;;  %v119_v44 = vld [vmem:[#allocation7 + $0xb8] sm:$0xff]  ;;  %v116_v45 = vld [vmem:[#allocation7 + $0xa0] sm:$0xff]  ;;  %v118_v46 = vld [vmem:[#allocation7 + $0xb0] sm:$0xff] }
  0x49   :  { %307 = vmatprep.subr.mxu1 %v135_v28  ;;  %195 = vmatpush1.msra.mxu0 %v132_v29  ;;  %v113_v47 = vld [vmem:[#allocation7 + $0x88] sm:$0xff]  ;;  %v115_v48 = vld [vmem:[#allocation7 + $0x98] sm:$0xff]  ;;  %v112_v49 = vld [vmem:[#allocation7 + $0x80] sm:$0xff] }
  0x4a   :  { %308 = vmatpush1.msra.mxu1 %v134_v30  ;;  %196 = vmatprep.subr.mxu0 %v129_v31  ;;  %v114_v50 = vld [vmem:[#allocation7 + $0x90] sm:$0xff]  ;;  %v109_v51 = vld [vmem:[#allocation7 + $0x68] sm:$0xff]  ;;  %v111_v52 = vld [vmem:[#allocation7 + $0x78] sm:$0xff] }
  0x4b   :  { %309 = vmatprep.subr.mxu1 %v131_v32  ;;  %197 = vmatpush1.msra.mxu0 %v128_v33  ;;  %v108_v53 = vld [vmem:[#allocation7 + $0x60] sm:$0xff]  ;;  %v110_v54 = vld [vmem:[#allocation7 + $0x70] sm:$0xff]  ;;  %v105_v55 = vld [vmem:[#allocation7 + $0x48] sm:$0xff] }
  0x4c   :  { %310 = vmatpush1.msra.mxu1 %v130_v34  ;;  %198 = vmatprep.subr.mxu0 %v125_v35  ;;  %v107_v56 = vld [vmem:[#allocation7 + $0x58] sm:$0xff]  ;;  %v104_v57 = vld [vmem:[#allocation7 + $0x40] sm:$0xff]  ;;  %v106_v58 = vld [vmem:[#allocation7 + $0x50] sm:$0xff] }
  0x4d   :  { %311 = vmatprep.subr.mxu1 %v127_v36  ;;  %199 = vmatpush1.msra.mxu0 %v124_v37  ;;  %v101_v59 = vld [vmem:[#allocation7 + $0x28] sm:$0xff]  ;;  %v103_v60 = vld [vmem:[#allocation7 + $0x38] sm:$0xff]  ;;  %v100_v61 = vld [vmem:[#allocation7 + $0x20] sm:$0xff] }
  0x4e   :  { %312 = vmatpush1.msra.mxu1 %v126_v38  ;;  %200 = vmatprep.subr.mxu0 %v121_v39  ;;  %v102_v62 = vld [vmem:[#allocation7 + $0x30] sm:$0xff]  ;;  %v97_v63 = vld [vmem:[#allocation7 + $0x8] sm:$0xff]  ;;  %v99_v0 = vld [vmem:[#allocation7 + $0x18] sm:$0xff] }
  0x4f   :  { %313 = vmatprep.subr.mxu1 %v123_v40  ;;  %201 = vmatpush1.msra.mxu0 %v120_v41  ;;  %v96_v3 = vld [vmem:[#allocation7] sm:$0xff]  ;;  %v98_v4 = vld [vmem:[#allocation7 + $0x10] sm:$0xff]  ;;  %v2216_v7 = vld [vmem:[#allocation9 + $0xec] ss:$16 sps:$4 sm:$0xff]  }
  0x50   :  { %314 = vmatpush1.msra.mxu1 %v122_v42  ;;  %202 = vmatprep.subr.mxu0 %v117_v43  ;;  %v88_v5 = vld [vmem:[#allocation4] sm:$0xff]  ;;  %v2220_v9 = vld [vmem:[#allocation9 + $0xe8] ss:$16 sps:$4 sm:$0xff]   ;;  %v2226_v12 = vld [vmem:[#allocation9 + $0xcc] ss:$16 sps:$4 sm:$0xff]  }
  0x51   :  { %315 = vmatprep.subr.mxu1 %v119_v44  ;;  %203 = vmatpush1.msra.mxu0 %v116_v45  ;;  %v2214_v6 = vld [vmem:[#allocation9 + $0xe4] ss:$16 sps:$4 sm:$0xff]   ;;  %v2218_v8 = vld [vmem:[#allocation9 + $0xe0] ss:$16 sps:$4 sm:$0xff]   ;;  %v89_v10 = vld [vmem:[#allocation4 + $0x8] sm:$0xff]  ;;  %v162_v45 = vlaneseq }
  0x52   :  { %316 = vmatpush1.msra.mxu1 %v118_v46  ;;  %204 = vmatprep.subr.mxu0 %v113_v47  ;;  %v2222_v11 = vld [vmem:[#allocation9 + $0xc4] ss:$16 sps:$4 sm:$0xff]   ;;  %v2230_v13 = vld [vmem:[#allocation9 + $0xc0] ss:$16 sps:$4 sm:$0xff]   ;;  %v2232_v14 = vld [vmem:[#allocation9 + $0xc8] ss:$16 sps:$4 sm:$0xff]  }
  0x53   :  { %317 = vmatprep.subr.mxu1 %v115_v48  ;;  %205 = vmatpush1.msra.mxu0 %v112_v49  ;;  %v90_v15 = vld [vmem:[#allocation4 + $0x10] sm:$0xff]  ;;  %v2240_v17 = vld [vmem:[#allocation9 + $0xac] ss:$16 sps:$4 sm:$0xff]   ;;  %v2246_v19 = vld [vmem:[#allocation9 + $0xa8] ss:$16 sps:$4 sm:$0xff]   ;;  %v163_v46 = vshrl.u32 %v162_v45, 7 }
  0x54   :  { %318 = vmatpush1.msra.mxu1 %v114_v50  ;;  %206 = vmatprep.subr.mxu0 %v109_v51  ;;  %v2238_v16 = vld [vmem:[#allocation9 + $0xa4] ss:$16 sps:$4 sm:$0xff]   ;;  %v2244_v18 = vld [vmem:[#allocation9 + $0xa0] ss:$16 sps:$4 sm:$0xff]   ;;  %v91_v20 = vld [vmem:[#allocation4 + $0x18] sm:$0xff] }
  0x55   :  { %319 = vmatprep.subr.mxu1 %v111_v52  ;;  %207 = vmatpush1.msra.mxu0 %v108_v53  ;;  %v2250_v21 = vld [vmem:[#allocation9 + $0x84] ss:$16 sps:$4 sm:$0xff]   ;;  %v2254_v22 = vld [vmem:[#allocation9 + $0x8c] ss:$16 sps:$4 sm:$0xff]   ;;  %v2256_v23 = vld [vmem:[#allocation9 + $0x80] ss:$16 sps:$4 sm:$0xff]  }
  0x56   :  { %320 = vmatpush1.msra.mxu1 %v110_v54  ;;  %208 = vmatprep.subr.mxu0 %v105_v55  ;;  %v2260_v24 = vld [vmem:[#allocation9 + $0x88] ss:$16 sps:$4 sm:$0xff]   ;;  %v92_v25 = vld [vmem:[#allocation4 + $0x20] sm:$0xff]  ;;  %v2268_v27 = vld [vmem:[#allocation9 + $0x6c] ss:$16 sps:$4 sm:$0xff]   ;;  %v164_v47 = vsub.s32 0, %v163_v46 }
  0x57   :  { %321 = vmatprep.subr.mxu1 %v107_v56  ;;  %209 = vmatpush1.msra.mxu0 %v104_v57  ;;  %v2266_v26 = vld [vmem:[#allocation9 + $0x64] ss:$16 sps:$4 sm:$0xff]   ;;  %v2272_v28 = vld [vmem:[#allocation9 + $0x60] ss:$16 sps:$4 sm:$0xff]   ;;  %v2274_v29 = vld [vmem:[#allocation9 + $0x68] ss:$16 sps:$4 sm:$0xff]  }
  0x58   :  { %322 = vmatpush1.msra.mxu1 %v106_v58  ;;  %210 = vmatprep.subr.mxu0 %v101_v59  ;;  %v93_v30 = vld [vmem:[#allocation4 + $0x28] sm:$0xff]  ;;  %v2280_v31 = vld [vmem:[#allocation9 + $0x44] ss:$16 sps:$4 sm:$0xff]   ;;  %v2286_v33 = vld [vmem:[#allocation9 + $0x40] ss:$16 sps:$4 sm:$0xff]   ;;  %v172_v48 = vsub.s32 2, %v163_v46 }
  0x59   :  { %323 = vmatprep.subr.mxu1 %v103_v60  ;;  %211 = vmatpush1.msra.mxu0 %v100_v61  ;;  %v2282_v32 = vld [vmem:[#allocation9 + $0x4c] ss:$16 sps:$4 sm:$0xff]   ;;  %v2288_v34 = vld [vmem:[#allocation9 + $0x48] ss:$16 sps:$4 sm:$0xff]   ;;  %v94_v35 = vld [vmem:[#allocation4 + $0x30] sm:$0xff]  ;;  %v168_v52 = vsub.s32 1, %v163_v46 }
  0x5a   :  { %324 = vmatpush1.msra.mxu1 %v102_v62  ;;  %212 = vmatprep.subr.mxu0 %v97_v63  ;;  %v2294_v36 = vld [vmem:[#allocation9 + $0x24] ss:$16 sps:$4 sm:$0xff]   ;;  %v2296_v37 = vld [vmem:[#allocation9 + $0x2c] ss:$16 sps:$4 sm:$0xff]   ;;  %v2300_v38 = vld [vmem:[#allocation9 + $0x20] ss:$16 sps:$4 sm:$0xff]  }
  0x5b   :  { %325 = vmatprep.subr.mxu1 %v99_v0  ;;  %213 = vmatpush1.msra.mxu0 %v96_v3  ;;  %v2302_v39 = vld [vmem:[#allocation9 + $0x28] ss:$16 sps:$4 sm:$0xff]   ;;  %v2308_v41 = vld [vmem:[#allocation9 + $0x4] ss:$16 sps:$4 sm:$0xff]   ;;  %v2310_v42 = vld [vmem:[#allocation9 + $0xc] ss:$16 sps:$4 sm:$0xff]  }
  0x5c   :  { %326 = vmatpush1.msra.mxu1 %v98_v4  ;;  %247 = vmatmul.mubr.f32.vlgmr.msra.gmra.mxu0 %v88_v5  ;;  %v95_v40 = vld [vmem:[#allocation4 + $0x38] sm:$0xff]  ;;  %v2314_v43 = vld [vmem:[#allocation9] ss:$16 sps:$4 sm:$0xff]   ;;  %v176_v53 = vsub.s32 3, %v163_v46 }
  0x5d   :  { %360 = vmatmul.mubr.f32.vlgmr.msra.gmra.mxu1 %v88_v5  ;;  %636 = vmatprep.subr.bf16.mxu0 %v2214_v6  ;;  %v2316_v44 = vld [vmem:[#allocation9 + $0x8] ss:$16 sps:$4 sm:$0xff]   ;;  %v160_v49 = vld [vmem:[%s2782_s3] sm:$0xf] }
  0x5e   :  { %677 = vmatprep.subr.bf16.mxu1 %v2216_v7  ;;  %637 = vmatpush1.bf16.msra.mxu0 %v2218_v8  ;;  %v165_v56 = vrot.slane %v160_v49, %v164_v47  ;;  %v2375_v57 = vrot.slane %v160_v49, %v172_v48  ;;  %v169_v60 = vrot.slane %v160_v49, %v168_v52 }
  0x5f   :  { %678 = vmatpush1.bf16.msra.mxu1 %v2220_v9  ;;  %252 = vmatprep.mubr.f32.mxu0 %v2788_v1  ;;  %v2377_v61 = vrot.slane %v160_v49, %v176_v53 }
  0x60   :  { %365 = vmatprep.mubr.f32.mxu1 %v2788_v1  ;;  %253 = vmatmul.mubr.f32.gmra.mxu0 %v89_v10 }
  0x61   :  { %366 = vmatmul.mubr.f32.gmra.mxu1 %v89_v10  ;;  %638 = vmatprep.subr.bf16.mxu0 %v2222_v11 }
  0x62   :  { %679 = vmatprep.subr.bf16.mxu1 %v2226_v12  ;;  %639 = vmatpush1.bf16.msra.mxu0 %v2230_v13 }
  0x63   :  { %680 = vmatpush1.bf16.msra.mxu1 %v2232_v14  ;;  %258 = vmatprep.mubr.f32.mxu0 %v2788_v1 }
  0x64   :  { %371 = vmatprep.mubr.f32.mxu1 %v2788_v1  ;;  %259 = vmatmul.mubr.f32.gmra.mxu0 %v90_v15 }
  0x65   :  { %372 = vmatmul.mubr.f32.gmra.mxu1 %v90_v15  ;;  %640 = vmatprep.subr.bf16.mxu0 %v2238_v16 }
  0x66   :  { %681 = vmatprep.subr.bf16.mxu1 %v2240_v17  ;;  %641 = vmatpush1.bf16.msra.mxu0 %v2244_v18 }
  0x67   :  { %682 = vmatpush1.bf16.msra.mxu1 %v2246_v19  ;;  %264 = vmatprep.mubr.f32.mxu0 %v2788_v1 }
  0x68   :  { %377 = vmatprep.mubr.f32.mxu1 %v2788_v1  ;;  %265 = vmatmul.mubr.f32.gmra.mxu0 %v91_v20 }
  0x69   :  { %378 = vmatmul.mubr.f32.gmra.mxu1 %v91_v20  ;;  %642 = vmatprep.subr.bf16.mxu0 %v2250_v21 }
  0x6a   :  { %683 = vmatprep.subr.bf16.mxu1 %v2254_v22  ;;  %643 = vmatpush1.bf16.msra.mxu0 %v2256_v23 }
  0x6b   :  { %684 = vmatpush1.bf16.msra.mxu1 %v2260_v24  ;;  %270 = vmatprep.mubr.f32.mxu0 %v2788_v1 }
  0x6c   :  { %383 = vmatprep.mubr.f32.mxu1 %v2788_v1  ;;  %271 = vmatmul.mubr.f32.gmra.mxu0 %v92_v25 }
  0x6d   :  { %384 = vmatmul.mubr.f32.gmra.mxu1 %v92_v25  ;;  %644 = vmatprep.subr.bf16.mxu0 %v2266_v26 }
  0x6e   :  { %685 = vmatprep.subr.bf16.mxu1 %v2268_v27  ;;  %645 = vmatpush1.bf16.msra.mxu0 %v2272_v28 }
  0x6f   :  { %686 = vmatpush1.bf16.msra.mxu1 %v2274_v29  ;;  %276 = vmatprep.mubr.f32.mxu0 %v2788_v1 }
  0x70   :  { %389 = vmatprep.mubr.f32.mxu1 %v2788_v1  ;;  %277 = vmatmul.mubr.f32.gmra.mxu0 %v93_v30 }
  0x71   :  { %390 = vmatmul.mubr.f32.gmra.mxu1 %v93_v30  ;;  %646 = vmatprep.subr.bf16.mxu0 %v2280_v31 }
  0x72   :  { %687 = vmatprep.subr.bf16.mxu1 %v2282_v32  ;;  %647 = vmatpush1.bf16.msra.mxu0 %v2286_v33 }
  0x73   :  { %688 = vmatpush1.bf16.msra.mxu1 %v2288_v34  ;;  %282 = vmatprep.mubr.f32.mxu0 %v2788_v1 }
  0x74   :  { %395 = vmatprep.mubr.f32.mxu1 %v2788_v1  ;;  %283 = vmatmul.mubr.f32.gmra.mxu0 %v94_v35 }
  0x75   :  { %396 = vmatmul.mubr.f32.gmra.mxu1 %v94_v35  ;;  %648 = vmatprep.subr.bf16.mxu0 %v2294_v36 }
  0x76   :  { %689 = vmatprep.subr.bf16.mxu1 %v2296_v37  ;;  %649 = vmatpush1.bf16.msra.mxu0 %v2300_v38 }
  0x77   :  { %690 = vmatpush1.bf16.msra.mxu1 %v2302_v39  ;;  %288 = vmatprep.mubr.f32.mxu0 %v2788_v1 }
  0x78   :  { %401 = vmatprep.mubr.f32.mxu1 %v2788_v1  ;;  %289 = vmatmul.mubr.f32.gmra.mxu0 %v95_v40 }
  0x79   :  { %402 = vmatmul.mubr.f32.gmra.mxu1 %v95_v40  ;;  %650 = vmatprep.subr.bf16.mxu0 %v2308_v41 }
  0x7a   :  { %691 = vmatprep.subr.bf16.mxu1 %v2310_v42  ;;  %651 = vmatpush1.bf16.msra.mxu0 %v2314_v43 }
  0x7b   :  { %692 = vmatpush1.bf16.msra.mxu1 %v2316_v44  ;;  %668 = vmatprep.mubr.bf16.mxu0 %v2790_v2 }
  0x7c   :  { %709 = vmatprep.mubr.bf16.mxu1 %v2790_v2  ;;  %752 = vmatprep.subr.bf16.mxu0 %v2214_v6 }
  0x7d   :  { %793 = vmatprep.subr.bf16.mxu1 %v2216_v7  ;;  %669 = vmatmul.mubr.bf16.vlgmr.msra.gmra.mxu0 %v2790_v2 }
  0x7e   :  { %710 = vmatmul.mubr.bf16.vlgmr.msra.gmra.mxu1 %v2790_v2  ;;  %753 = vmatpush1.bf16.msra.mxu0 %v2218_v8 }
  0x7f   :  { %794 = vmatpush1.bf16.msra.mxu1 %v2220_v9  ;;  %754 = vmatprep.subr.bf16.mxu0 %v2222_v11 }
  0x80   :  { %795 = vmatprep.subr.bf16.mxu1 %v2226_v12  ;;  %784 = vmatprep.mubr.bf16.mxu0 %v2790_v2 }
  0x81   :  { %825 = vmatprep.mubr.bf16.mxu1 %v2790_v2 }
  0x82   :  { %755 = vmatpush1.bf16.msra.mxu0 %v2230_v13 }
  0x83   :  { %796 = vmatpush1.bf16.msra.mxu1 %v2232_v14  ;;  %756 = vmatprep.subr.bf16.mxu0 %v2238_v16 }
  0x84   :  { %797 = vmatprep.subr.bf16.mxu1 %v2240_v17 }
  0x86   :  { %757 = vmatpush1.bf16.msra.mxu0 %v2244_v18 }
  0x87   :  { %798 = vmatpush1.bf16.msra.mxu1 %v2246_v19  ;;  %758 = vmatprep.subr.bf16.mxu0 %v2250_v21 }
  0x88   :  { %799 = vmatprep.subr.bf16.mxu1 %v2254_v22 }
  0x8a   :  { %759 = vmatpush1.bf16.msra.mxu0 %v2256_v23 }
  0x8b   :  { %800 = vmatpush1.bf16.msra.mxu1 %v2260_v24  ;;  %760 = vmatprep.subr.bf16.mxu0 %v2266_v26 }
  0x8c   :  { %801 = vmatprep.subr.bf16.mxu1 %v2268_v27 }
  0x8e   :  { %761 = vmatpush1.bf16.msra.mxu0 %v2272_v28 }
  0x8f   :  { %802 = vmatpush1.bf16.msra.mxu1 %v2274_v29  ;;  %762 = vmatprep.subr.bf16.mxu0 %v2280_v31 }
  0x90   :  { %803 = vmatprep.subr.bf16.mxu1 %v2282_v32 }
  0x92   :  { %763 = vmatpush1.bf16.msra.mxu0 %v2286_v33 }
  0x93   :  { %804 = vmatpush1.bf16.msra.mxu1 %v2288_v34  ;;  %764 = vmatprep.subr.bf16.mxu0 %v2294_v36 }
  0x94   :  { %805 = vmatprep.subr.bf16.mxu1 %v2296_v37 }
  0x96   :  { %765 = vmatpush1.bf16.msra.mxu0 %v2300_v38 }
  0x97   :  { %806 = vmatpush1.bf16.msra.mxu1 %v2302_v39  ;;  %766 = vmatprep.subr.bf16.mxu0 %v2308_v41 }
  0x98   :  { %807 = vmatprep.subr.bf16.mxu1 %v2310_v42 }
  0x9a   :  { %767 = vmatpush1.bf16.msra.mxu0 %v2314_v43 }
  0x9b   :  { %808 = vmatpush1.bf16.msra.mxu1 %v2316_v44  ;;  %868 = vmatprep.subr.bf16.mxu0 %v2214_v6 }
  0x9c   :  { %909 = vmatprep.subr.bf16.mxu1 %v2216_v7 }
 0x11c   :  { %v2367_v50 = vpop.f32.mrf.mxu0 }
 0x11d   :  { %v2369_v51 = vpop.f32.mrf.mxu1 }
 0x11e   :  { %v2371_v54 = vpop.f32.mrf.mxu0 }
 0x11f   :  { %v2373_v55 = vpop.f32.mrf.mxu1 }
 0x120   :  { %v254_v58 = vpop.f32.mrf.mxu0 }
 0x121   :  { %v367_v59 = vpop.f32.mrf.mxu1  ;;  %v2379_v62 = vadd.f32 %v254_v58, %v165_v56 }
 0x122   :  { %v2382_v63 = vadd.f32 %v367_v59, %v2375_v57  ;;  %v256_v0 = vpop.f32.mrf.mxu0 }
 0x123   :  { %v369_v3 = vpop.f32.mrf.mxu1  ;;  %v2384_v4 = vadd.f32 %v256_v0, %v169_v60 }
 0x124   :  { %v2387_v5 = vadd.f32 %v369_v3, %v2377_v61  ;;  %v260_v10 = vpop.f32.mrf.mxu0 }
 0x125   :  { %v373_v15 = vpop.f32.mrf.mxu1  ;;  %v2389_v20 = vadd.f32 %v260_v10, %v165_v56 }
 0x126   :  { %v2392_v25 = vadd.f32 %v373_v15, %v2375_v57  ;;  %v262_v30 = vpop.f32.mrf.mxu0 }
 0x127   :  { %v375_v35 = vpop.f32.mrf.mxu1  ;;  %v2394_v40 = vadd.f32 %v262_v30, %v169_v60 }
 0x128   :  { %v2397_v45 = vadd.f32 %v375_v35, %v2377_v61  ;;  %v266_v46 = vpop.f32.mrf.mxu0 }
 0x129   :  { %v379_v47 = vpop.f32.mrf.mxu1  ;;  %v2399_v48 = vadd.f32 %v266_v46, %v165_v56 }
 0x12a   :  { %v2402_v49 = vadd.f32 %v379_v47, %v2375_v57  ;;  %v268_v52 = vpop.f32.mrf.mxu0 }
 0x12b   :  { %2792 = vst [vmem:[#allocation17_spill] sm:$0xff] %v2399_v48  ;;  %v381_v53 = vpop.f32.mrf.mxu1  ;;  %v2404_v58 = vadd.f32 %v268_v52, %v169_v60 }
 0x12c   :  { %2793 = vst [vmem:[#allocation18_spill] sm:$0xff] %v2402_v49  ;;  %v2407_v59 = vadd.f32 %v381_v53, %v2377_v61  ;;  %v272_v0 = vpop.f32.mrf.mxu0 }
 0x12d   :  { %2794 = vst [vmem:[#allocation19_spill] sm:$0xff] %v2404_v58  ;;  %v385_v3 = vpop.f32.mrf.mxu1  ;;  %v2409_v10 = vadd.f32 %v272_v0, %v165_v56 }
 0x12e   :  { %2795 = vst [vmem:[#allocation20_spill] sm:$0xff] %v2407_v59  ;;  %v2412_v15 = vadd.f32 %v385_v3, %v2375_v57  ;;  %v274_v30 = vpop.f32.mrf.mxu0 }
 0x12f   :  { %2796 = vst [vmem:[#allocation21_spill] sm:$0xff] %v2409_v10  ;;  %v387_v35 = vpop.f32.mrf.mxu1  ;;  %v2414_v46 = vadd.f32 %v274_v30, %v169_v60 }
 0x130   :  { %2797 = vst [vmem:[#allocation22_spill] sm:$0xff] %v2412_v15  ;;  %v2417_v47 = vadd.f32 %v387_v35, %v2377_v61  ;;  %v278_v1 = vpop.f32.mrf.mxu0 }
 0x131   :  { %2798 = vst [vmem:[#allocation23_spill] sm:$0xff] %v2414_v46  ;;  %v391_v52 = vpop.f32.mrf.mxu1  ;;  %v2419_v2 = vadd.f32 %v278_v1, %v165_v56 }
 0x132   :  { %2799 = vst [vmem:[#allocation24_spill] sm:$0xff] %v2417_v47  ;;  %v2422_v53 = vadd.f32 %v391_v52, %v2375_v57  ;;  %v280_v49 = vpop.f32.mrf.mxu0 }
 0x133   :  { %2800 = vst [vmem:[#allocation25_spill] sm:$0xff] %v2419_v2  ;;  %v393_v0 = vpop.f32.mrf.mxu1  ;;  %v2424_v10 = vadd.f32 %v280_v49, %v169_v60 }
 0x134   :  { %2801 = vst [vmem:[#allocation26_spill] sm:$0xff] %v2422_v53  ;;  %v2427_v3 = vadd.f32 %v393_v0, %v2377_v61  ;;  %v284_v15 = vpop.f32.mrf.mxu0 }
 0x135   :  { %2802 = vst [vmem:[#allocation27_spill] sm:$0xff] %v2424_v10  ;;  %v397_v30 = vpop.f32.mrf.mxu1  ;;  %v2429_v46 = vadd.f32 %v284_v15, %v165_v56 }
 0x136   :  { %2803 = vst [vmem:[#allocation28_spill] sm:$0xff] %v2427_v3  ;;  %v2432_v35 = vadd.f32 %v397_v30, %v2375_v57  ;;  %v286_v47 = vpop.f32.mrf.mxu0 }
 0x137   :  { %2804 = vst [vmem:[#allocation29_spill] sm:$0xff] %v2429_v46  ;;  %v399_v1 = vpop.f32.mrf.mxu1  ;;  %v2434_v2 = vadd.f32 %v286_v47, %v169_v60  ;;  %v249_v47 = vadd.f32 %v2367_v50, %v165_v56 }
 0x138   :  { %2805 = vst [vmem:[#allocation30_spill] sm:$0xff] %v2432_v35  ;;  %v2437_v52 = vadd.f32 %v399_v1, %v2377_v61  ;;  %v290_v53 = vpop.f32.mrf.mxu0  ;;  %v251_v1 = vadd.f32 %v2371_v54, %v169_v60 }
 0x139   :  { %2806 = vst [vmem:[#allocation31_spill] sm:$0xff] %v2434_v2  ;;  %v403_v49 = vpop.f32.mrf.mxu1  ;;  %v2439_v10 = vadd.f32 %v290_v53, %v165_v56  ;;  %v362_v56 = vadd.f32 %v2369_v51, %v2375_v57 }
 0x13a   :  { %2807 = vst [vmem:[#allocation32_spill] sm:$0xff] %v2437_v52  ;;  %v2442_v0 = vadd.f32 %v403_v49, %v2375_v57  ;;  %v292_v3 = vpop.f32.mrf.mxu0 }
 0x13b   :  { %2808 = vst [vmem:[#allocation33_spill] sm:$0xff] %v2439_v10  ;;  %v405_v15 = vpop.f32.mrf.mxu1  ;;  %v2444_v46 = vadd.f32 %v292_v3, %v169_v60 }
 0x13c   :  { %2809 = vst [vmem:[#allocation34_spill] sm:$0xff] %v2442_v0  ;;  %v2447_v30 = vadd.f32 %v405_v15, %v2377_v61  ;;  %v364_v15 = vadd.f32 %v2373_v55, %v2377_v61 }
 0x13d   :  { %2810 = vst [vmem:[#allocation35_spill] sm:$0xff] %v2444_v46  ;;  %v670_v35 = vpop.f32.mrf.mxu0 }
 0x13e   :  { %v711_v2 = vpop.f32.mrf.mxu1  ;;  %v718_v52 = vadd.f32 %v670_v35, %v249_v47 }
 0x13f   :  { %v672_v59 = vpop.f32.mrf.mxu0  ;;  %v720_v35 = vadd.f32 %v711_v2, %v362_v56 }
 0x140   :  { %v713_v53 = vpop.f32.mrf.mxu1  ;;  %v1727_v10 = vmul.f32 -1.442695, %v718_v52  ;;  %v719_v58 = vadd.f32 %v672_v59, %v251_v1 }
 0x141   :  { %v674_v49 = vpop.f32.mrf.mxu0  ;;  %v721_v50 = vadd.f32 %v713_v53, %v364_v15 }
 0x142   :  { %v715_v0 = vpop.f32.mrf.mxu1  ;;  %1869 = vpow2.f32 %v1727_v10  ;;  %v1728_v48 = vmul.f32 -1.442695, %v719_v58  ;;  %v2811_v49 = vmov 0  }
 0x143   :  { %v675_v3 = vpop.f32.mrf.mxu0  ;;  %v1729_v54 = vmul.f32 -1.442695, %v721_v50 }
 0x144   :  { %v716_v46 = vpop.f32.mrf.mxu1  ;;  %1871 = vpow2.f32 %v1728_v48 }
 0x145   :  { %1873 = vpow2.f32 %v1729_v54 }
 0x14f   :  { %v1870_v60 = vpop.eup %1869 }
 0x150   :  { %v725_v47 = vadd.f32 1.0, %v1870_v60 }
 0x151   :  { %v1872_v52 = vpop.eup %1871 }
 0x152   :  { %1875 = vrcp.f32 %v725_v47  ;;  %v731_v59 = vadd.f32 1.0, %v1872_v52  ;;  %v1874_v58 = vpop.eup %1873 }
 0x153   :  { %1877 = vtanh.f32 %v720_v35  ;;  %v738_v0 = vadd.f32 1.0, %v1874_v58 }
 0x154   :  { %1879 = vrcp.f32 %v731_v59 }
 0x155   :  { %1881 = vrcp.f32 %v738_v0 }
 0x15f   :  { %v1876_v10 = vpop.eup %1875 }
 0x160   :  { %v1878_v48 = vpop.eup %1877 }
 0x161   :  { %v1880_v46 = vpop.eup %1879  ;;  %v742_v61 = vmul.f32 %v1878_v48, %v1876_v10 }
 0x162   :  { %v741_v55 = vmul.f32 0.0, %v1880_v46  ;;  %v1882_v2 = vpop.eup %1881 }
 0x164   :  { %v2455_v1 = vadd.f32 %v742_v61, %v741_v55 }
 0x166   :  { %1883 = vtanh.f32 %v2455_v1 }
 0x173   :  { %v1884_v51 = vpop.eup %1883 }
 0x174   :  { %v745_v57 = vmul.f32 %v1884_v51, %v1882_v2 }
 0x176   :  { %v751_v53 = vpack.c.bf16 %v745_v57, %v745_v57 }
 0x178   :  { %785 = vmatmul.mubr.bf16.vlgmr.msra.gmra.mxu0 %v751_v53  ;;  %826 = vmatmul.mubr.bf16.vlgmr.msra.gmra.mxu1 %v751_v53 }
 0x179   :  { %869 = vmatpush1.bf16.msra.mxu0 %v2218_v8  ;;  %910 = vmatpush1.bf16.msra.mxu1 %v2220_v9 }
 0x17a   :  { %870 = vmatprep.subr.bf16.mxu0 %v2222_v11  ;;  %911 = vmatprep.subr.bf16.mxu1 %v2226_v12 }
 0x17b   :  { %900 = vmatprep.mubr.bf16.mxu0 %v2811_v49  ;;  %941 = vmatprep.mubr.bf16.mxu1 %v2811_v49 }
 0x17d   :  { %871 = vmatpush1.bf16.msra.mxu0 %v2230_v13  ;;  %912 = vmatpush1.bf16.msra.mxu1 %v2232_v14 }
 0x17e   :  { %872 = vmatprep.subr.bf16.mxu0 %v2238_v16  ;;  %913 = vmatprep.subr.bf16.mxu1 %v2240_v17 }
 0x181   :  { %873 = vmatpush1.bf16.msra.mxu0 %v2244_v18  ;;  %914 = vmatpush1.bf16.msra.mxu1 %v2246_v19 }
 0x182   :  { %874 = vmatprep.subr.bf16.mxu0 %v2250_v21  ;;  %915 = vmatprep.subr.bf16.mxu1 %v2254_v22 }
 0x185   :  { %875 = vmatpush1.bf16.msra.mxu0 %v2256_v23  ;;  %916 = vmatpush1.bf16.msra.mxu1 %v2260_v24 }
 0x186   :  { %876 = vmatprep.subr.bf16.mxu0 %v2266_v26  ;;  %917 = vmatprep.subr.bf16.mxu1 %v2268_v27 }
 0x189   :  { %877 = vmatpush1.bf16.msra.mxu0 %v2272_v28  ;;  %918 = vmatpush1.bf16.msra.mxu1 %v2274_v29 }
 0x18a   :  { %878 = vmatprep.subr.bf16.mxu0 %v2280_v31  ;;  %919 = vmatprep.subr.bf16.mxu1 %v2282_v32 }
 0x18d   :  { %879 = vmatpush1.bf16.msra.mxu0 %v2286_v33  ;;  %920 = vmatpush1.bf16.msra.mxu1 %v2288_v34 }
 0x18e   :  { %880 = vmatprep.subr.bf16.mxu0 %v2294_v36  ;;  %921 = vmatprep.subr.bf16.mxu1 %v2296_v37 }
 0x191   :  { %881 = vmatpush1.bf16.msra.mxu0 %v2300_v38  ;;  %922 = vmatpush1.bf16.msra.mxu1 %v2302_v39 }
 0x192   :  { %882 = vmatprep.subr.bf16.mxu0 %v2308_v41  ;;  %923 = vmatprep.subr.bf16.mxu1 %v2310_v42 }
 0x195   :  { %883 = vmatpush1.bf16.msra.mxu0 %v2314_v43  ;;  %924 = vmatpush1.bf16.msra.mxu1 %v2316_v44 }
 0x196   :  { %984 = vmatprep.subr.bf16.mxu0 %v2214_v6  ;;  %1025 = vmatprep.subr.bf16.mxu1 %v2216_v7 }
 0x238   :  { %v786_v3 = vpop.f32.mrf.mxu0  ;;  %v827_v15 = vpop.f32.mrf.mxu1 }
 0x239   :  { %v834_v50 = vadd.f32 %v786_v3, %v2379_v62  ;;  %v836_v46 = vadd.f32 %v827_v15, %v2382_v63 }
 0x23a   :  { %v788_v56 = vpop.f32.mrf.mxu0  ;;  %v829_v54 = vpop.f32.mrf.mxu1 }
 0x23b   :  { %v1730_v60 = vmul.f32 -1.442695, %v834_v50  ;;  %v835_v35 = vadd.f32 %v788_v56, %v2384_v4  ;;  %v837_v48 = vadd.f32 %v829_v54, %v2387_v5 }
 0x23c   :  { %v790_v47 = vpop.f32.mrf.mxu0  ;;  %v831_v52 = vpop.f32.mrf.mxu1 }
 0x23d   :  { %1885 = vpow2.f32 %v1730_v60  ;;  %v1731_v59 = vmul.f32 -1.442695, %v835_v35  ;;  %v1732_v0 = vmul.f32 -1.442695, %v837_v48 }
 0x23e   :  { %v791_v58 = vpop.f32.mrf.mxu0  ;;  %v832_v10 = vpop.f32.mrf.mxu1 }
 0x23f   :  { %1887 = vpow2.f32 %v1731_v59 }
 0x240   :  { %1889 = vtanh.f32 %v836_v46 }
 0x241   :  { %1891 = vpow2.f32 %v1732_v0 }
 0x24a   :  { %v1886_v55 = vpop.eup %1885 }
 0x24b   :  { %v841_v61 = vadd.f32 1.0, %v1886_v55 }
 0x24c   :  { %v1888_v62 = vpop.eup %1887 }
 0x24d   :  { %1893 = vrcp.f32 %v841_v61  ;;  %v847_v2 = vadd.f32 1.0, %v1888_v62  ;;  %v1890_v4 = vpop.eup %1889 }
 0x24e   :  { %v1892_v51 = vpop.eup %1891 }
 0x24f   :  { %1895 = vrcp.f32 %v847_v2  ;;  %v854_v50 = vadd.f32 1.0, %v1892_v51 }
 0x251   :  { %1897 = vrcp.f32 %v854_v50 }
 0x25a   :  { %v1894_v57 = vpop.eup %1893 }
 0x25b   :  { %v858_v53 = vmul.f32 %v1894_v57, %v1890_v4 }
 0x25c   :  { %v1896_v3 = vpop.eup %1895 }
 0x25d   :  { %v857_v56 = vmul.f32 %v1896_v3, %v2455_v1 }
 0x25e   :  { %v1898_v63 = vpop.eup %1897 }
 0x25f   :  { %v2497_v5 = vadd.f32 %v858_v53, %v857_v56 }
 0x261   :  { %1899 = vtanh.f32 %v2497_v5 }
 0x26e   :  { %v1900_v15 = vpop.eup %1899 }
 0x26f   :  { %v861_v54 = vmul.f32 %v1900_v15, %v1898_v63 }
 0x271   :  { %v867_v60 = vpack.c.bf16 %v861_v54, %v861_v54 }
 0x273   :  { %901 = vmatmul.mubr.bf16.vlgmr.msra.gmra.mxu0 %v867_v60  ;;  %942 = vmatmul.mubr.bf16.vlgmr.msra.gmra.mxu1 %v867_v60 }
 0x274   :  { %985 = vmatpush1.bf16.msra.mxu0 %v2218_v8  ;;  %1026 = vmatpush1.bf16.msra.mxu1 %v2220_v9 }
 0x275   :  { %986 = vmatprep.subr.bf16.mxu0 %v2222_v11  ;;  %1027 = vmatprep.subr.bf16.mxu1 %v2226_v12 }
 0x276   :  { %1016 = vmatprep.mubr.bf16.mxu0 %v2811_v49  ;;  %1057 = vmatprep.mubr.bf16.mxu1 %v2811_v49 }
 0x278   :  { %987 = vmatpush1.bf16.msra.mxu0 %v2230_v13  ;;  %1028 = vmatpush1.bf16.msra.mxu1 %v2232_v14 }
 0x279   :  { %988 = vmatprep.subr.bf16.mxu0 %v2238_v16  ;;  %1029 = vmatprep.subr.bf16.mxu1 %v2240_v17 }
 0x27c   :  { %989 = vmatpush1.bf16.msra.mxu0 %v2244_v18  ;;  %1030 = vmatpush1.bf16.msra.mxu1 %v2246_v19 }
 0x27d   :  { %990 = vmatprep.subr.bf16.mxu0 %v2250_v21  ;;  %1031 = vmatprep.subr.bf16.mxu1 %v2254_v22 }
 0x280   :  { %991 = vmatpush1.bf16.msra.mxu0 %v2256_v23  ;;  %1032 = vmatpush1.bf16.msra.mxu1 %v2260_v24 }
 0x281   :  { %992 = vmatprep.subr.bf16.mxu0 %v2266_v26  ;;  %1033 = vmatprep.subr.bf16.mxu1 %v2268_v27 }
 0x284   :  { %993 = vmatpush1.bf16.msra.mxu0 %v2272_v28  ;;  %1034 = vmatpush1.bf16.msra.mxu1 %v2274_v29 }
 0x285   :  { %994 = vmatprep.subr.bf16.mxu0 %v2280_v31  ;;  %1035 = vmatprep.subr.bf16.mxu1 %v2282_v32 }
 0x288   :  { %995 = vmatpush1.bf16.msra.mxu0 %v2286_v33  ;;  %1036 = vmatpush1.bf16.msra.mxu1 %v2288_v34 }
 0x289   :  { %996 = vmatprep.subr.bf16.mxu0 %v2294_v36  ;;  %1037 = vmatprep.subr.bf16.mxu1 %v2296_v37 }
 0x28c   :  { %997 = vmatpush1.bf16.msra.mxu0 %v2300_v38  ;;  %1038 = vmatpush1.bf16.msra.mxu1 %v2302_v39 }
 0x28d   :  { %998 = vmatprep.subr.bf16.mxu0 %v2308_v41  ;;  %1039 = vmatprep.subr.bf16.mxu1 %v2310_v42 }
 0x290   :  { %999 = vmatpush1.bf16.msra.mxu0 %v2314_v43  ;;  %1040 = vmatpush1.bf16.msra.mxu1 %v2316_v44 }
 0x291   :  { %1100 = vmatprep.subr.bf16.mxu0 %v2214_v6  ;;  %1141 = vmatprep.subr.bf16.mxu1 %v2216_v7 }
 0x333   :  { %v902_v1 = vpop.f32.mrf.mxu0  ;;  %v943_v35 = vpop.f32.mrf.mxu1 }
 0x334   :  { %v950_v47 = vadd.f32 %v902_v1, %v2389_v20  ;;  %v952_v2 = vadd.f32 %v943_v35, %v2392_v25 }
 0x335   :  { %v904_v52 = vpop.f32.mrf.mxu0  ;;  %v945_v59 = vpop.f32.mrf.mxu1 }
 0x336   :  { %v1733_v58 = vmul.f32 -1.442695, %v950_v47  ;;  %v951_v10 = vadd.f32 %v904_v52, %v2394_v40  ;;  %v953_v62 = vadd.f32 %v945_v59, %v2397_v45  ;;  %v2812_v52 = vld [vmem:[#allocation17_spill] sm:$0xff] }
 0x337   :  { %v906_v48 = vpop.f32.mrf.mxu0  ;;  %v947_v46 = vpop.f32.mrf.mxu1 }
 0x338   :  { %1901 = vpow2.f32 %v1733_v58  ;;  %v1734_v0 = vmul.f32 -1.442695, %v951_v10  ;;  %v1735_v4 = vmul.f32 -1.442695, %v953_v62  ;;  %v2813_v46 = vld [vmem:[#allocation19_spill] sm:$0xff] }
 0x339   :  { %v907_v55 = vpop.f32.mrf.mxu0  ;;  %v948_v61 = vpop.f32.mrf.mxu1 }
 0x33a   :  { %1903 = vpow2.f32 %v1734_v0 }
 0x33b   :  { %1905 = vtanh.f32 %v952_v2 }
 0x33c   :  { %1907 = vpow2.f32 %v1735_v4 }
 0x345   :  { %v1902_v51 = vpop.eup %1901 }
 0x346   :  { %v957_v57 = vadd.f32 1.0, %v1902_v51  ;;  %v2814_v51 = vld [vmem:[#allocation20_spill] sm:$0xff] }
 0x347   :  { %v1904_v20 = vpop.eup %1903 }
 0x348   :  { %1909 = vrcp.f32 %v957_v57  ;;  %v963_v53 = vadd.f32 1.0, %v1904_v20  ;;  %v1906_v40 = vpop.eup %1905  ;;  %v2815_v57 = vld [vmem:[#allocation18_spill] sm:$0xff] }
 0x349   :  { %v1908_v3 = vpop.eup %1907 }
 0x34a   :  { %1911 = vrcp.f32 %v963_v53  ;;  %v970_v15 = vadd.f32 1.0, %v1908_v3 }
 0x34c   :  { %1913 = vrcp.f32 %v970_v15 }
 0x355   :  { %v1910_v50 = vpop.eup %1909 }
 0x356   :  { %v974_v56 = vmul.f32 %v1910_v50, %v1906_v40 }
 0x357   :  { %v1912_v63 = vpop.eup %1911 }
 0x358   :  { %v973_v54 = vmul.f32 %v1912_v63, %v2497_v5 }
 0x359   :  { %v1914_v25 = vpop.eup %1913 }
 0x35a   :  { %v2539_v45 = vadd.f32 %v974_v56, %v973_v54 }
 0x35c   :  { %1915 = vtanh.f32 %v2539_v45 }
 0x369   :  { %v1916_v60 = vpop.eup %1915 }
 0x36a   :  { %v977_v1 = vmul.f32 %v1916_v60, %v1914_v25 }
 0x36c   :  { %v983_v35 = vpack.c.bf16 %v977_v1, %v977_v1 }
 0x36e   :  { %1017 = vmatmul.mubr.bf16.vlgmr.msra.gmra.mxu0 %v983_v35  ;;  %1058 = vmatmul.mubr.bf16.vlgmr.msra.gmra.mxu1 %v983_v35 }
 0x36f   :  { %1101 = vmatpush1.bf16.msra.mxu0 %v2218_v8  ;;  %1142 = vmatpush1.bf16.msra.mxu1 %v2220_v9 }
 0x370   :  { %1102 = vmatprep.subr.bf16.mxu0 %v2222_v11  ;;  %1143 = vmatprep.subr.bf16.mxu1 %v2226_v12 }
 0x371   :  { %1132 = vmatprep.mubr.bf16.mxu0 %v2811_v49  ;;  %1173 = vmatprep.mubr.bf16.mxu1 %v2811_v49 }
 0x373   :  { %1103 = vmatpush1.bf16.msra.mxu0 %v2230_v13  ;;  %1144 = vmatpush1.bf16.msra.mxu1 %v2232_v14 }
 0x374   :  { %1104 = vmatprep.subr.bf16.mxu0 %v2238_v16  ;;  %1145 = vmatprep.subr.bf16.mxu1 %v2240_v17 }
 0x377   :  { %1105 = vmatpush1.bf16.msra.mxu0 %v2244_v18  ;;  %1146 = vmatpush1.bf16.msra.mxu1 %v2246_v19 }
 0x378   :  { %1106 = vmatprep.subr.bf16.mxu0 %v2250_v21  ;;  %1147 = vmatprep.subr.bf16.mxu1 %v2254_v22 }
 0x37b   :  { %1107 = vmatpush1.bf16.msra.mxu0 %v2256_v23  ;;  %1148 = vmatpush1.bf16.msra.mxu1 %v2260_v24 }
 0x37c   :  { %1108 = vmatprep.subr.bf16.mxu0 %v2266_v26  ;;  %1149 = vmatprep.subr.bf16.mxu1 %v2268_v27 }
 0x37f   :  { %1109 = vmatpush1.bf16.msra.mxu0 %v2272_v28  ;;  %1150 = vmatpush1.bf16.msra.mxu1 %v2274_v29 }
 0x380   :  { %1110 = vmatprep.subr.bf16.mxu0 %v2280_v31  ;;  %1151 = vmatprep.subr.bf16.mxu1 %v2282_v32 }
 0x383   :  { %1111 = vmatpush1.bf16.msra.mxu0 %v2286_v33  ;;  %1152 = vmatpush1.bf16.msra.mxu1 %v2288_v34 }
 0x384   :  { %1112 = vmatprep.subr.bf16.mxu0 %v2294_v36  ;;  %1153 = vmatprep.subr.bf16.mxu1 %v2296_v37 }
 0x387   :  { %1113 = vmatpush1.bf16.msra.mxu0 %v2300_v38  ;;  %1154 = vmatpush1.bf16.msra.mxu1 %v2302_v39 }
 0x388   :  { %1114 = vmatprep.subr.bf16.mxu0 %v2308_v41  ;;  %1155 = vmatprep.subr.bf16.mxu1 %v2310_v42 }
 0x38b   :  { %1115 = vmatpush1.bf16.msra.mxu0 %v2314_v43  ;;  %1156 = vmatpush1.bf16.msra.mxu1 %v2316_v44 }
 0x38c   :  { %1216 = vmatprep.subr.bf16.mxu0 %v2214_v6  ;;  %1257 = vmatprep.subr.bf16.mxu1 %v2216_v7 }
 0x42e   :  { %v1018_v5 = vpop.f32.mrf.mxu0  ;;  %v1059_v47 = vpop.f32.mrf.mxu1 }
 0x42f   :  { %v1066_v59 = vadd.f32 %v1018_v5, %v2812_v52  ;;  %v1068_v7 = vadd.f32 %v1059_v47, %v2815_v57 }
 0x430   :  { %v1020_v58 = vpop.f32.mrf.mxu0  ;;  %v1061_v10 = vpop.f32.mrf.mxu1 }
 0x431   :  { %v1736_v48 = vmul.f32 -1.442695, %v1066_v59  ;;  %v1067_v0 = vadd.f32 %v1020_v58, %v2813_v46  ;;  %v1069_v6 = vadd.f32 %v1061_v10, %v2814_v51 }
 0x432   :  { %v1022_v55 = vpop.f32.mrf.mxu0  ;;  %v1063_v61 = vpop.f32.mrf.mxu1 }
 0x433   :  { %1917 = vpow2.f32 %v1736_v48  ;;  %v1737_v62 = vmul.f32 -1.442695, %v1067_v0  ;;  %v1738_v20 = vmul.f32 -1.442695, %v1069_v6 }
 0x434   :  { %v1023_v2 = vpop.f32.mrf.mxu0  ;;  %v1064_v4 = vpop.f32.mrf.mxu1 }
 0x435   :  { %1919 = vpow2.f32 %v1737_v62 }
 0x436   :  { %1921 = vtanh.f32 %v1068_v7 }
 0x437   :  { %1923 = vpow2.f32 %v1738_v20  ;;  %v2630_v20 = vld [vmem:[#allocation9 + $0xe0] ss:$16 sps:$4 sm:$0xff]  }
 0x440   :  { %v1918_v53 = vpop.eup %1917 }
 0x441   :  { %v1073_v40 = vadd.f32 1.0, %v1918_v53  ;;  %v2633_v53 = vld [vmem:[#allocation9 + $0xe8] ss:$16 sps:$4 sm:$0xff]  }
 0x442   :  { %v1920_v3 = vpop.eup %1919 }
 0x443   :  { %1925 = vrcp.f32 %v1073_v40  ;;  %v1079_v50 = vadd.f32 1.0, %v1920_v3  ;;  %v1922_v56 = vpop.eup %1921  ;;  %v2636_v40 = vld [vmem:[#allocation9 + $0xc4] ss:$16 sps:$4 sm:$0xff]   ;;  %v2639_v3 = vld [vmem:[#allocation9 + $0xcc] ss:$16 sps:$4 sm:$0xff]  }
 0x444   :  { %v1924_v63 = vpop.eup %1923 }
 0x445   :  { %1927 = vrcp.f32 %v1079_v50  ;;  %v1086_v60 = vadd.f32 1.0, %v1924_v63  ;;  %v2644_v50 = vld [vmem:[#allocation9 + $0xc0] ss:$16 sps:$4 sm:$0xff]   ;;  %v2650_v63 = vld [vmem:[#allocation9 + $0xa4] ss:$16 sps:$4 sm:$0xff]  }
 0x447   :  { %1929 = vrcp.f32 %v1086_v60  ;;  %v2662_v60 = vld [vmem:[#allocation9 + $0x84] ss:$16 sps:$4 sm:$0xff]  }
 0x450   :  { %v1926_v15 = vpop.eup %1925 }
 0x451   :  { %v1090_v54 = vmul.f32 %v1926_v15, %v1922_v56  ;;  %v2647_v56 = vld [vmem:[#allocation9 + $0xc8] ss:$16 sps:$4 sm:$0xff]   ;;  %v2653_v15 = vld [vmem:[#allocation9 + $0xac] ss:$16 sps:$4 sm:$0xff]  }
 0x452   :  { %v1928_v25 = vpop.eup %1927 }
 0x453   :  { %v1089_v1 = vmul.f32 %v1928_v25, %v2539_v45  ;;  %v2659_v25 = vld [vmem:[#allocation9 + $0xa8] ss:$16 sps:$4 sm:$0xff]  }
 0x454   :  { %v1930_v5 = vpop.eup %1929 }
 0x455   :  { %v2581_v35 = vadd.f32 %v1090_v54, %v1089_v1  ;;  %v2656_v54 = vld [vmem:[#allocation9 + $0xa0] ss:$16 sps:$4 sm:$0xff]   ;;  %v2665_v1 = vld [vmem:[#allocation9 + $0x8c] ss:$16 sps:$4 sm:$0xff]  }
 0x457   :  { %1931 = vtanh.f32 %v2581_v35 }
 0x464   :  { %v1932_v47 = vpop.eup %1931 }
 0x465   :  { %v1093_v52 = vmul.f32 %v1932_v47, %v1930_v5  ;;  %v2671_v5 = vld [vmem:[#allocation9 + $0x88] ss:$16 sps:$4 sm:$0xff]   ;;  %v2674_v47 = vld [vmem:[#allocation9 + $0x64] ss:$16 sps:$4 sm:$0xff]  }
 0x467   :  { %v1099_v59 = vpack.c.bf16 %v1093_v52, %v1093_v52  ;;  %v2677_v52 = vld [vmem:[#allocation9 + $0x6c] ss:$16 sps:$4 sm:$0xff]  }
 0x469   :  { %1133 = vmatmul.mubr.bf16.vlgmr.msra.gmra.mxu0 %v1099_v59  ;;  %1174 = vmatmul.mubr.bf16.vlgmr.msra.gmra.mxu1 %v1099_v59  ;;  %v2680_v59 = vld [vmem:[#allocation9 + $0x60] ss:$16 sps:$4 sm:$0xff]  }
 0x46a   :  { %1217 = vmatpush1.bf16.msra.mxu0 %v2218_v8  ;;  %1258 = vmatpush1.bf16.msra.mxu1 %v2220_v9  ;;  %v2616_v8 = vld [vmem:[#allocation9 + $0xe4] ss:$16 sps:$4 sm:$0xff]   ;;  %v2619_v9 = vld [vmem:[#allocation9 + $0xec] ss:$16 sps:$4 sm:$0xff]  }
 0x46b   :  { %1218 = vmatprep.subr.bf16.mxu0 %v2222_v11  ;;  %1259 = vmatprep.subr.bf16.mxu1 %v2226_v12 }
 0x46c   :  { %1248 = vmatprep.mubr.bf16.mxu0 %v2811_v49  ;;  %1289 = vmatprep.mubr.bf16.mxu1 %v2811_v49 }
 0x46e   :  { %1219 = vmatpush1.bf16.msra.mxu0 %v2230_v13  ;;  %1260 = vmatpush1.bf16.msra.mxu1 %v2232_v14  ;;  %v2816_v13 = vld [vmem:[#allocation21_spill] sm:$0xff] }
 0x46f   :  { %1220 = vmatprep.subr.bf16.mxu0 %v2238_v16  ;;  %1261 = vmatprep.subr.bf16.mxu1 %v2240_v17 }
 0x472   :  { %1221 = vmatpush1.bf16.msra.mxu0 %v2244_v18  ;;  %1262 = vmatpush1.bf16.msra.mxu1 %v2246_v19  ;;  %v2817_v19 = vld [vmem:[#allocation23_spill] sm:$0xff] }
 0x473   :  { %1222 = vmatprep.subr.bf16.mxu0 %v2250_v21  ;;  %1263 = vmatprep.subr.bf16.mxu1 %v2254_v22 }
 0x476   :  { %1223 = vmatpush1.bf16.msra.mxu0 %v2256_v23  ;;  %1264 = vmatpush1.bf16.msra.mxu1 %v2260_v24 }
 0x477   :  { %1224 = vmatprep.subr.bf16.mxu0 %v2266_v26  ;;  %1265 = vmatprep.subr.bf16.mxu1 %v2268_v27 }
 0x47a   :  { %1225 = vmatpush1.bf16.msra.mxu0 %v2272_v28  ;;  %1266 = vmatpush1.bf16.msra.mxu1 %v2274_v29  ;;  %v2818_v28 = vld [vmem:[#allocation24_spill] sm:$0xff] }
 0x47b   :  { %1226 = vmatprep.subr.bf16.mxu0 %v2280_v31  ;;  %1267 = vmatprep.subr.bf16.mxu1 %v2282_v32  ;;  %v2819_v31 = vld [vmem:[#allocation22_spill] sm:$0xff] }
 0x47e   :  { %1227 = vmatpush1.bf16.msra.mxu0 %v2286_v33  ;;  %1268 = vmatpush1.bf16.msra.mxu1 %v2288_v34 }
 0x47f   :  { %1228 = vmatprep.subr.bf16.mxu0 %v2294_v36  ;;  %1269 = vmatprep.subr.bf16.mxu1 %v2296_v37 }
 0x482   :  { %1229 = vmatpush1.bf16.msra.mxu0 %v2300_v38  ;;  %1270 = vmatpush1.bf16.msra.mxu1 %v2302_v39 }
 0x483   :  { %1230 = vmatprep.subr.bf16.mxu0 %v2308_v41  ;;  %1271 = vmatprep.subr.bf16.mxu1 %v2310_v42 }
 0x486   :  { %1231 = vmatpush1.bf16.msra.mxu0 %v2314_v43  ;;  %1272 = vmatpush1.bf16.msra.mxu1 %v2316_v44 }
 0x487   :  { %1332 = vmatprep.subr.bf16.mxu0 %v2616_v8  ;;  %1373 = vmatprep.subr.bf16.mxu1 %v2619_v9 }
 0x529   :  { %v1134_v11 = vpop.f32.mrf.mxu0  ;;  %v1175_v12 = vpop.f32.mrf.mxu1 }
 0x52a   :  { %v1182_v14 = vadd.f32 %v1134_v11, %v2816_v13  ;;  %v1184_v32 = vadd.f32 %v1175_v12, %v2819_v31  ;;  %v2683_v11 = vld [vmem:[#allocation9 + $0x68] ss:$16 sps:$4 sm:$0xff]   ;;  %v2686_v12 = vld [vmem:[#allocation9 + $0x44] ss:$16 sps:$4 sm:$0xff]   ;;  %v2689_v13 = vld [vmem:[#allocation9 + $0x4c] ss:$16 sps:$4 sm:$0xff]  }
 0x52b   :  { %v1136_v16 = vpop.f32.mrf.mxu0  ;;  %v1177_v17 = vpop.f32.mrf.mxu1 }
 0x52c   :  { %v1739_v18 = vmul.f32 -1.442695, %v1182_v14  ;;  %v1183_v21 = vadd.f32 %v1136_v16, %v2817_v19  ;;  %v1185_v29 = vadd.f32 %v1177_v17, %v2818_v28  ;;  %v2692_v14 = vld [vmem:[#allocation9 + $0x40] ss:$16 sps:$4 sm:$0xff]   ;;  %v2695_v16 = vld [vmem:[#allocation9 + $0x48] ss:$16 sps:$4 sm:$0xff]  }
 0x52d   :  { %v1138_v22 = vpop.f32.mrf.mxu0  ;;  %v1179_v23 = vpop.f32.mrf.mxu1 }
 0x52e   :  { %1933 = vpow2.f32 %v1739_v18  ;;  %v1740_v24 = vmul.f32 -1.442695, %v1183_v21  ;;  %v1741_v33 = vmul.f32 -1.442695, %v1185_v29  ;;  %v2820_v18 = vld [vmem:[#allocation25_spill] sm:$0xff] }
 0x52f   :  { %v1139_v26 = vpop.f32.mrf.mxu0  ;;  %v1180_v27 = vpop.f32.mrf.mxu1 }
 0x530   :  { %1935 = vpow2.f32 %v1740_v24  ;;  %v2823_v26 = vld [vmem:[#allocation26_spill] sm:$0xff] }
 0x531   :  { %1937 = vtanh.f32 %v1184_v32 }
 0x532   :  { %1939 = vpow2.f32 %v1741_v33 }
 0x53b   :  { %v1934_v34 = vpop.eup %1933 }
 0x53c   :  { %v1189_v45 = vadd.f32 1.0, %v1934_v34 }
 0x53d   :  { %v1936_v58 = vpop.eup %1935 }
 0x53e   :  { %1941 = vrcp.f32 %v1189_v45  ;;  %v1195_v10 = vadd.f32 1.0, %v1936_v58  ;;  %v1938_v48 = vpop.eup %1937 }
 0x53f   :  { %v1940_v46 = vpop.eup %1939 }
 0x540   :  { %1943 = vrcp.f32 %v1195_v10  ;;  %v1202_v62 = vadd.f32 1.0, %v1940_v46 }
 0x542   :  { %1945 = vrcp.f32 %v1202_v62 }
 0x54b   :  { %v1942_v0 = vpop.eup %1941 }
 0x54c   :  { %v1206_v55 = vmul.f32 %v1942_v0, %v1938_v48 }
 0x54d   :  { %v1944_v61 = vpop.eup %1943 }
 0x54e   :  { %v1205_v2 = vmul.f32 %v1944_v61, %v2581_v35  ;;  %v2668_v35 = vld [vmem:[#allocation9 + $0x80] ss:$16 sps:$4 sm:$0xff]  }
 0x54f   :  { %v1946_v51 = vpop.eup %1945 }
 0x550   :  { %v2627_v4 = vadd.f32 %v1206_v55, %v1205_v2 }
 0x552   :  { %1947 = vtanh.f32 %v2627_v4 }
 0x55f   :  { %v1948_v6 = vpop.eup %1947 }
 0x560   :  { %v1209_v57 = vmul.f32 %v1948_v6, %v1946_v51  ;;  %v2023_v51 = vld [vmem:[#allocation9 + $0x20] ss:$16 sps:$4 sm:$0xff]   ;;  %v2024_v6 = vld [vmem:[#allocation9 + $0x28] ss:$16 sps:$4 sm:$0xff]  }
 0x562   :  { %v1215_v7 = vpack.c.bf16 %v1209_v57, %v1209_v57  ;;  %v2025_v57 = vld [vmem:[#allocation9 + $0x4] ss:$16 sps:$4 sm:$0xff]  }
 0x564   :  { %1249 = vmatmul.mubr.bf16.vlgmr.msra.gmra.mxu0 %v1215_v7  ;;  %1290 = vmatmul.mubr.bf16.vlgmr.msra.gmra.mxu1 %v1215_v7  ;;  %v2026_v7 = vld [vmem:[#allocation9 + $0xc] ss:$16 sps:$4 sm:$0xff]  }
 0x565   :  { %1333 = vmatpush1.bf16.msra.mxu0 %v2630_v20  ;;  %1374 = vmatpush1.bf16.msra.mxu1 %v2633_v53 }
 0x566   :  { %1334 = vmatprep.subr.bf16.mxu0 %v2636_v40  ;;  %1375 = vmatprep.subr.bf16.mxu1 %v2639_v3 }
 0x567   :  { %1364 = vmatprep.mubr.bf16.mxu0 %v2811_v49  ;;  %1405 = vmatprep.mubr.bf16.mxu1 %v2811_v49 }
 0x569   :  { %1335 = vmatpush1.bf16.msra.mxu0 %v2644_v50  ;;  %1376 = vmatpush1.bf16.msra.mxu1 %v2647_v56 }
 0x56a   :  { %1336 = vmatprep.subr.bf16.mxu0 %v2650_v63  ;;  %1377 = vmatprep.subr.bf16.mxu1 %v2653_v15 }
 0x56d   :  { %1337 = vmatpush1.bf16.msra.mxu0 %v2656_v54  ;;  %1378 = vmatpush1.bf16.msra.mxu1 %v2659_v25 }
 0x56e   :  { %1338 = vmatprep.subr.bf16.mxu0 %v2662_v60  ;;  %1379 = vmatprep.subr.bf16.mxu1 %v2665_v1 }
 0x571   :  { %1339 = vmatpush1.bf16.msra.mxu0 %v2668_v35  ;;  %1380 = vmatpush1.bf16.msra.mxu1 %v2671_v5 }
 0x572   :  { %1340 = vmatprep.subr.bf16.mxu0 %v2674_v47  ;;  %1381 = vmatprep.subr.bf16.mxu1 %v2677_v52 }
 0x575   :  { %1341 = vmatpush1.bf16.msra.mxu0 %v2680_v59  ;;  %1382 = vmatpush1.bf16.msra.mxu1 %v2683_v11 }
 0x576   :  { %1342 = vmatprep.subr.bf16.mxu0 %v2686_v12  ;;  %1383 = vmatprep.subr.bf16.mxu1 %v2689_v13 }
 0x579   :  { %1343 = vmatpush1.bf16.msra.mxu0 %v2692_v14  ;;  %1384 = vmatpush1.bf16.msra.mxu1 %v2695_v16 }
 0x57a   :  { %1344 = vmatprep.subr.bf16.mxu0 %v2294_v36  ;;  %1385 = vmatprep.subr.bf16.mxu1 %v2296_v37 }
 0x57d   :  { %1345 = vmatpush1.bf16.msra.mxu0 %v2300_v38  ;;  %1386 = vmatpush1.bf16.msra.mxu1 %v2302_v39  ;;  %v2821_v39 = vld [vmem:[#allocation27_spill] sm:$0xff] }
 0x57e   :  { %1346 = vmatprep.subr.bf16.mxu0 %v2308_v41  ;;  %1387 = vmatprep.subr.bf16.mxu1 %v2310_v42 }
 0x581   :  { %1347 = vmatpush1.bf16.msra.mxu0 %v2314_v43  ;;  %1388 = vmatpush1.bf16.msra.mxu1 %v2316_v44  ;;  %v2822_v44 = vld [vmem:[#allocation28_spill] sm:$0xff] }
 0x582   :  { %1448 = vmatprep.subr.bf16.mxu0 %v2616_v8  ;;  %1489 = vmatprep.subr.bf16.mxu1 %v2619_v9 }
 0x624   :  { %v1250_v17 = vpop.f32.mrf.mxu0  ;;  %v1291_v36 = vpop.f32.mrf.mxu1 }
 0x625   :  { %v1298_v37 = vadd.f32 %v1250_v17, %v2820_v18  ;;  %v1300_v9 = vadd.f32 %v1291_v36, %v2823_v26  ;;  %v1573_v26 = vld [vmem:[#allocation10 + $0x78] sm:$0xff] }
 0x626   :  { %v1252_v19 = vpop.f32.mrf.mxu0  ;;  %v1293_v38 = vpop.f32.mrf.mxu1 }
 0x627   :  { %v1742_v21 = vmul.f32 -1.442695, %v1298_v37  ;;  %v1299_v22 = vadd.f32 %v1252_v19, %v2821_v39  ;;  %v1301_v8 = vadd.f32 %v1293_v38, %v2822_v44 }
 0x628   :  { %v1254_v41 = vpop.f32.mrf.mxu0  ;;  %v1295_v23 = vpop.f32.mrf.mxu1 }
 0x629   :  { %1949 = vpow2.f32 %v1742_v21  ;;  %v1743_v42 = vmul.f32 -1.442695, %v1299_v22  ;;  %v1744_v27 = vmul.f32 -1.442695, %v1301_v8 }
 0x62a   :  { %v1255_v43 = vpop.f32.mrf.mxu0  ;;  %v1296_v24 = vpop.f32.mrf.mxu1 }
 0x62b   :  { %1951 = vpow2.f32 %v1743_v42 }
 0x62c   :  { %1953 = vtanh.f32 %v1300_v9  ;;  %v1572_v9 = vld [vmem:[#allocation10 + $0x70] sm:$0xff] }
 0x62d   :  { %1955 = vpow2.f32 %v1744_v27  ;;  %v1571_v27 = vld [vmem:[#allocation10 + $0x68] sm:$0xff] }
 0x636   :  { %v1950_v28 = vpop.eup %1949 }
 0x637   :  { %v1305_v29 = vadd.f32 1.0, %v1950_v28  ;;  %v1570_v28 = vld [vmem:[#allocation10 + $0x60] sm:$0xff] }
 0x638   :  { %v1952_v31 = vpop.eup %1951 }
 0x639   :  { %1957 = vrcp.f32 %v1305_v29  ;;  %v1311_v32 = vadd.f32 1.0, %v1952_v31  ;;  %v1954_v33 = vpop.eup %1953  ;;  %v1569_v29 = vld [vmem:[#allocation10 + $0x58] sm:$0xff]  ;;  %v1568_v31 = vld [vmem:[#allocation10 + $0x50] sm:$0xff] }
 0x63a   :  { %v1956_v34 = vpop.eup %1955 }
 0x63b   :  { %1959 = vrcp.f32 %v1311_v32  ;;  %v1318_v48 = vadd.f32 1.0, %v1956_v34  ;;  %v1567_v32 = vld [vmem:[#allocation10 + $0x48] sm:$0xff]  ;;  %v1565_v34 = vld [vmem:[#allocation10 + $0x38] sm:$0xff] }
 0x63d   :  { %1961 = vrcp.f32 %v1318_v48  ;;  %v1561_v48 = vld [vmem:[#allocation10 + $0x18] sm:$0xff] }
 0x646   :  { %v1958_v45 = vpop.eup %1957 }
 0x647   :  { %v1322_v58 = vmul.f32 %v1958_v45, %v1954_v33  ;;  %v1566_v33 = vld [vmem:[#allocation10 + $0x40] sm:$0xff]  ;;  %v1564_v45 = vld [vmem:[#allocation10 + $0x30] sm:$0xff] }
 0x648   :  { %v1960_v10 = vpop.eup %1959 }
 0x649   :  { %v1321_v46 = vmul.f32 %v1960_v10, %v2627_v4  ;;  %v2022_v4 = vld [vmem:[#allocation9 + $0x2c] ss:$16 sps:$4 sm:$0xff]   ;;  %v1562_v10 = vld [vmem:[#allocation10 + $0x20] sm:$0xff] }
 0x64a   :  { %v1962_v55 = vpop.eup %1961 }
 0x64b   :  { %v2713_v0 = vadd.f32 %v1322_v58, %v1321_v46  ;;  %v1563_v58 = vld [vmem:[#allocation10 + $0x28] sm:$0xff]  ;;  %v1560_v46 = vld [vmem:[#allocation10 + $0x10] sm:$0xff] }
 0x64d   :  { %1963 = vtanh.f32 %v2713_v0 }
 0x65a   :  { %v1964_v61 = vpop.eup %1963 }
 0x65b   :  { %v1325_v62 = vmul.f32 %v1964_v61, %v1962_v55  ;;  %v1558_v55 = vld [vmem:[#allocation10] sm:$0xff] }
 0x65d   :  { %v1331_v2 = vpack.c.bf16 %v1325_v62, %v1325_v62 }
 0x65f   :  { %1365 = vmatmul.mubr.bf16.vlgmr.msra.gmra.mxu0 %v1331_v2  ;;  %1406 = vmatmul.mubr.bf16.vlgmr.msra.gmra.mxu1 %v1331_v2  ;;  %v2829_v2 = vld [vmem:[#allocation33_spill] sm:$0xff] }
 0x660   :  { %1449 = vmatpush1.bf16.msra.mxu0 %v2630_v20  ;;  %1490 = vmatpush1.bf16.msra.mxu1 %v2633_v53  ;;  %v2027_v20 = vld [vmem:[#allocation9] ss:$16 sps:$4 sm:$0xff]   ;;  %v2028_v53 = vld [vmem:[#allocation9 + $0x8] ss:$16 sps:$4 sm:$0xff]  }
 0x661   :  { %1450 = vmatprep.subr.bf16.mxu0 %v2636_v40  ;;  %1491 = vmatprep.subr.bf16.mxu1 %v2639_v3  ;;  %v2824_v40 = vmov 0.0  }
 0x662   :  { %1480 = vmatprep.mubr.bf16.mxu0 %v2811_v49  ;;  %1521 = vmatprep.mubr.bf16.mxu1 %v2811_v49  ;;  %v2021_v49 = vld [vmem:[#allocation9 + $0x24] ss:$16 sps:$4 sm:$0xff]  }
 0x664   :  { %1451 = vmatpush1.bf16.msra.mxu0 %v2644_v50  ;;  %1492 = vmatpush1.bf16.msra.mxu1 %v2647_v56  ;;  %v2825_v56 = vld [vmem:[#allocation29_spill] sm:$0xff] }
 0x665   :  { %1452 = vmatprep.subr.bf16.mxu0 %v2650_v63  ;;  %1493 = vmatprep.subr.bf16.mxu1 %v2653_v15 }
 0x668   :  { %1453 = vmatpush1.bf16.msra.mxu0 %v2656_v54  ;;  %1494 = vmatpush1.bf16.msra.mxu1 %v2659_v25 }
 0x669   :  { %1454 = vmatprep.subr.bf16.mxu0 %v2662_v60  ;;  %1495 = vmatprep.subr.bf16.mxu1 %v2665_v1  ;;  %v2826_v60 = vld [vmem:[#allocation31_spill] sm:$0xff] }
 0x66c   :  { %1455 = vmatpush1.bf16.msra.mxu0 %v2668_v35  ;;  %1496 = vmatpush1.bf16.msra.mxu1 %v2671_v5 }
 0x66d   :  { %1456 = vmatprep.subr.bf16.mxu0 %v2674_v47  ;;  %1497 = vmatprep.subr.bf16.mxu1 %v2677_v52 }
 0x670   :  { %1457 = vmatpush1.bf16.msra.mxu0 %v2680_v59  ;;  %1498 = vmatpush1.bf16.msra.mxu1 %v2683_v11  ;;  %v2827_v11 = vld [vmem:[#allocation32_spill] sm:$0xff] }
 0x671   :  { %1458 = vmatprep.subr.bf16.mxu0 %v2686_v12  ;;  %1499 = vmatprep.subr.bf16.mxu1 %v2689_v13  ;;  %v2828_v13 = vld [vmem:[#allocation30_spill] sm:$0xff] }
 0x674   :  { %1459 = vmatpush1.bf16.msra.mxu0 %v2692_v14  ;;  %1500 = vmatpush1.bf16.msra.mxu1 %v2695_v16 }
 0x675   :  { %1460 = vmatprep.subr.bf16.mxu0 %v2021_v49  ;;  %1501 = vmatprep.subr.bf16.mxu1 %v2022_v4 }
 0x678   :  { %1461 = vmatpush1.bf16.msra.mxu0 %v2023_v51  ;;  %1502 = vmatpush1.bf16.msra.mxu1 %v2024_v6 }
 0x679   :  { %1462 = vmatprep.subr.bf16.mxu0 %v2025_v57  ;;  %1503 = vmatprep.subr.bf16.mxu1 %v2026_v7  ;;  %v2830_v57 = vld [vmem:[#allocation35_spill] sm:$0xff] }
 0x67c   :  { %1463 = vmatpush1.bf16.msra.mxu0 %v2027_v20  ;;  %1504 = vmatpush1.bf16.msra.mxu1 %v2028_v53 }
 0x67d   :  { %1771 = vmatprep.subr.mxu0 %v2824_v40 }
 0x71f   :  { %v1366_v3 = vpop.f32.mrf.mxu0  ;;  %v1407_v50 = vpop.f32.mrf.mxu1 }
 0x720   :  { %v1414_v63 = vadd.f32 %v1366_v3, %v2825_v56  ;;  %v1416_v14 = vadd.f32 %v1407_v50, %v2828_v13 }
 0x721   :  { %v1368_v15 = vpop.f32.mrf.mxu0  ;;  %v1409_v54 = vpop.f32.mrf.mxu1 }
 0x722   :  { %v1745_v25 = vmul.f32 -1.442695, %v1414_v63  ;;  %v1415_v1 = vadd.f32 %v1368_v15, %v2826_v60  ;;  %v1417_v12 = vadd.f32 %v1409_v54, %v2827_v11 }
 0x723   :  { %v1370_v35 = vpop.f32.mrf.mxu0  ;;  %v1411_v5 = vpop.f32.mrf.mxu1 }
 0x724   :  { %1965 = vpow2.f32 %v1745_v25  ;;  %v1746_v47 = vmul.f32 -1.442695, %v1415_v1  ;;  %v1747_v16 = vmul.f32 -1.442695, %v1417_v12 }
 0x725   :  { %v1371_v52 = vpop.f32.mrf.mxu0  ;;  %v1412_v59 = vpop.f32.mrf.mxu1 }
 0x726   :  { %1967 = vpow2.f32 %v1746_v47 }
 0x727   :  { %1969 = vtanh.f32 %v1416_v14 }
 0x728   :  { %1971 = vpow2.f32 %v1747_v16 }
 0x731   :  { %v1966_v17 = vpop.eup %1965 }
 0x732   :  { %v1421_v36 = vadd.f32 1.0, %v1966_v17 }
 0x733   :  { %v1968_v18 = vpop.eup %1967 }
 0x734   :  { %1973 = vrcp.f32 %v1421_v36  ;;  %v1427_v37 = vadd.f32 1.0, %v1968_v18  ;;  %v1970_v19 = vpop.eup %1969  ;;  %v1751_v36 = vld [vmem:[%s2784_s5] ss:$0 sm:$0xff]  ;;  %s2109_s5 = scalar_lea.vmem %s1685_s12, 128 }
 0x735   :  { %v1972_v38 = vpop.eup %1971  ;;  %p2110_p6 = scmp.ne.s32.totalorder %s1685_s12, %s2109_s5  ;;  %p2115_p8 = scmp.lt.s32.totalorder %s2109_s5, %s2109_s5 }
 0x736   :  { %1975 = vrcp.f32 %v1427_v37  ;;  %v1434_v41 = vadd.f32 1.0, %v1972_v38 }
 0x737   :  { %p2116_p9 = por %p2115_p8, %p2114_p7 }
 0x738   :  { %1977 = vrcp.f32 %v1434_v41  ;;  %v1753_v41 = vld [vmem:[#allocation3] ss:$0 sm:$0xff] }
 0x739   :  { %p2117_p10 = pnand %p2116_p9, %p2110_p6 }
 0x741   :  { %v1974_v21 = vpop.eup %1973 }
 0x742   :  { %v1438_v39 = vmul.f32 %v1974_v21, %v1970_v19  ;;  %v1752_v21 = vld [vmem:[%s2785_s6] ss:$0 sm:$0xff] }
 0x743   :  { %v1976_v22 = vpop.eup %1975 }
 0x744   :  { %v1437_v23 = vmul.f32 %v1976_v22, %v2713_v0  ;;  %v1559_v0 = vld [vmem:[#allocation10 + $0x8] sm:$0xff] }
 0x745   :  { %v1978_v43 = vpop.eup %1977 }
 0x746   :  { %v2746_v42 = vadd.f32 %v1438_v39, %v1437_v23 }
 0x748   :  { %1979 = vtanh.f32 %v2746_v42 }
 0x755   :  { %v1980_v24 = vpop.eup %1979 }
 0x756   :  { %v1441_v44 = vmul.f32 %v1980_v24, %v1978_v43 }
 0x758   :  { %v1447_v8 = vpack.c.bf16 %v1441_v44, %v1441_v44 }
 0x75a   :  { %1481 = vmatmul.mubr.bf16.vlgmr.msra.gmra.mxu0 %v1447_v8  ;;  %1522 = vmatmul.mubr.bf16.vlgmr.msra.gmra.mxu1 %v1447_v8 }
 0x75b   :  { %1772 = vmatpush3.msra.mxu0 %v1573_v26  ;;  %1803 = vmatprep.mubr.msk.f32.mxu0 %vm2149_vm0, %v2824_v40 }
 0x75c   :  { %1773 = vmatprep.subr.mxu0 %v2824_v40 }
 0x75d   :  { %1774 = vmatpush3.msra.mxu0 %v1572_v9 }
 0x75e   :  { %1775 = vmatprep.subr.mxu0 %v2824_v40 }
 0x75f   :  { %1776 = vmatpush3.msra.mxu0 %v1571_v27 }
 0x760   :  { %1777 = vmatprep.subr.mxu0 %v2824_v40 }
 0x761   :  { %1778 = vmatpush3.msra.mxu0 %v1570_v28 }
 0x762   :  { %1779 = vmatprep.subr.mxu0 %v2824_v40 }
 0x763   :  { %1780 = vmatpush3.msra.mxu0 %v1569_v29 }
 0x764   :  { %1781 = vmatprep.subr.mxu0 %v2824_v40 }
 0x765   :  { %1782 = vmatpush3.msra.mxu0 %v1568_v31 }
 0x766   :  { %1783 = vmatprep.subr.mxu0 %v2824_v40 }
 0x767   :  { %1784 = vmatpush3.msra.mxu0 %v1567_v32 }
 0x768   :  { %1785 = vmatprep.subr.mxu0 %v2824_v40 }
 0x769   :  { %1786 = vmatpush3.msra.mxu0 %v1566_v33 }
 0x76a   :  { %1787 = vmatprep.subr.mxu0 %v2824_v40 }
 0x76b   :  { %1788 = vmatpush3.msra.mxu0 %v1565_v34 }
 0x76c   :  { %1789 = vmatprep.subr.mxu0 %v2824_v40 }
 0x76d   :  { %1790 = vmatpush3.msra.mxu0 %v1564_v45 }
 0x76e   :  { %1791 = vmatprep.subr.mxu0 %v2824_v40 }
 0x76f   :  { %1792 = vmatpush3.msra.mxu0 %v1563_v58 }
 0x770   :  { %1793 = vmatprep.subr.mxu0 %v2824_v40 }
 0x771   :  { %1794 = vmatpush3.msra.mxu0 %v1562_v10 }
 0x772   :  { %1795 = vmatprep.subr.mxu0 %v2824_v40 }
 0x773   :  { %1796 = vmatpush3.msra.mxu0 %v1561_v48 }
 0x774   :  { %1797 = vmatprep.subr.mxu0 %v2824_v40 }
 0x775   :  { %1798 = vmatpush3.msra.mxu0 %v1560_v46 }
 0x776   :  { %1799 = vmatprep.subr.mxu0 %v2824_v40 }
 0x777   :  { %1800 = vmatpush3.msra.mxu0 %v1559_v0 }
 0x778   :  { %1801 = vmatprep.subr.mxu0 %v2824_v40  ;;  %v2831_v40 = vld [vmem:[#allocation34_spill] sm:$0xff] }
 0x779   :  { %1802 = vmatpush3.msra.mxu0 %v1558_v55 }
 0x81a   :  { %v1482_v61 = vpop.f32.mrf.mxu0  ;;  %v1523_v62 = vpop.f32.mrf.mxu1 }
 0x81b   :  { %v1530_v49 = vadd.f32 %v1482_v61, %v2829_v2  ;;  %v1532_v15 = vadd.f32 %v1523_v62, %v2831_v40 }
 0x81c   :  { %v1484_v4 = vpop.f32.mrf.mxu0  ;;  %v1525_v51 = vpop.f32.mrf.mxu1 }
 0x81d   :  { %v1748_v6 = vmul.f32 -1.442695, %v1530_v49  ;;  %v1531_v7 = vadd.f32 %v1484_v4, %v2830_v57  ;;  %v1533_v63 = vadd.f32 %v1525_v51, %v2447_v30 }
 0x81e   :  { %v1486_v20 = vpop.f32.mrf.mxu0  ;;  %v1527_v53 = vpop.f32.mrf.mxu1 }
 0x81f   :  { %1981 = vpow2.f32 %v1748_v6  ;;  %v1749_v3 = vmul.f32 -1.442695, %v1531_v7  ;;  %v1750_v54 = vmul.f32 -1.442695, %v1533_v63 }
 0x820   :  { %v1487_v50 = vpop.f32.mrf.mxu0  ;;  %v1528_v56 = vpop.f32.mrf.mxu1 }
 0x821   :  { %1983 = vpow2.f32 %v1749_v3 }
 0x822   :  { %1985 = vtanh.f32 %v1532_v15 }
 0x823   :  { %1987 = vpow2.f32 %v1750_v54 }
 0x82c   :  { %v1982_v25 = vpop.eup %1981 }
 0x82d   :  { %v1537_v60 = vadd.f32 1.0, %v1982_v25 }
 0x82e   :  { %v1984_v1 = vpop.eup %1983 }
 0x82f   :  { %1989 = vrcp.f32 %v1537_v60  ;;  %v1543_v35 = vadd.f32 1.0, %v1984_v1  ;;  %v1986_v5 = vpop.eup %1985 }
 0x830   :  { %v1988_v47 = vpop.eup %1987 }
 0x831   :  { %1991 = vrcp.f32 %v1543_v35  ;;  %v1550_v12 = vadd.f32 1.0, %v1988_v47 }
 0x833   :  { %1993 = vrcp.f32 %v1550_v12 }
 0x83c   :  { %v1990_v52 = vpop.eup %1989 }
 0x83d   :  { %v1554_v59 = vmul.f32 %v1990_v52, %v1986_v5 }
 0x83e   :  { %v1992_v11 = vpop.eup %1991 }
 0x83f   :  { %v1553_v13 = vmul.f32 %v1992_v11, %v2746_v42 }
 0x840   :  { %v1994_v14 = vpop.eup %1993 }
 0x841   :  { %v1555_v30 = vadd.f32 %v1554_v59, %v1553_v13 }
 0x843   :  { %1995 = vtanh.f32 %v1555_v30 }
 0x850   :  { %v1996_v16 = vpop.eup %1995 }
 0x851   :  { %v1557_v17 = vmul.f32 %v1996_v16, %v1994_v14 }
 0x853   :  { %1804 = vmatmul.mubr.f32.vlgmr.msra.gmra.mxu0 %v1557_v17 }
 0x913   :  { %v1647_v18 = vpop.f32.mrf.mxu0 }
 0x914   :  { %v1648_v37 = vadd.f32 %v1751_v36, %v1647_v18 }
 0x915   :  { %v1805_v19 = vpop.f32.mrf.mxu0 }
 0x916   :  { %v1652_v38 = vmul.f32 0.2, %v1648_v37  ;;  %vm1651_vm1 = vcmp.gt.f32.partialorder %v1648_v37, 0.0 }
 0x918   :  { %v1653_v39 = vsel %vm1651_vm1, %v1648_v37, %v1652_v38 }
 0x919   :  { %v1661_v22 = vmul.f32 %v1752_v21, %v1653_v39 }
 0x91b   :  { %1662 = vadd.xlane.f32.xlu0 %v1661_v22 }
 0x9a4   :  { %v1663_v23 = vpop.xlane.xlu0 %1662 }
 0x9a5   :  { %v1671_v42 = vadd.f32 %v1753_v41, %v1663_v23 }
 0x9a7   :  { %1674 = vperm.xlu0 %1820, %v1671_v42  }
 0xa22   :  { %v1675_v43 = vpop.permute.xlu0 %1674 }
 0xa23   :  { %1677 = vst [vmem:[#allocation12] sm:$0xff] %v1675_v43 }
 0xa24   :  { %2120 = shalt.err (!%p2117_p10)
}
 0xa25   :  { %1687 = dma.vmem_to_hbm [thread:$0]  %s1685_s12, 128, %s2787_s8, [#allocation6]  }
 0xa26   :  { %2135 = dma.done.wait [#allocation6], 128  }
 0xa27   :  { %2136 = vsyncadd [#allocation6], 4294967168 }
 0xa28   :  { %1691 = vsyncpa [#allocation5], 1 }
 0xa29   :  { %1692 = vsyncpa [#allocation8], 1 }
 0xa2a   :  { %1693 = vsyncpa [#allocation11], 1 }
 0xa2b   :  { %1694 = vsyncpa [#allocation6], 1 }

</bundles_post_ra>
